<compile_context>
chip_gen: v6e
topology: v6e:2x2x1
jax: 0.10.0
libtpu: 0.0.40
codegen_flags: <defaults>
</compile_context>

<pallas_src>
import functools

import jax
import jax.numpy as jnp
from jax import lax
from jax.experimental import pallas as pl
from jax.experimental.pallas import tpu as pltpu


def _round_up(x, m):
    return (x + m - 1) // m * m


# ----------------------------- conv + bias (in-kernel im2col, MXU) ------------------------------
def _make_conv_kernel(k, th, w_out, cin, ctp):
    """Builds the kernel for one (batch, row-tile) grid step."""

    def kernel(x_ref, w_ref, b_ref, o_ref):
        # x_ref: (1, Hp+2p, W+2p, Cin) bf16 -- whole padded image for this batch element
        #        (constant index along the row-tile axis -> DMA'd once per batch, revisited).
        # w_ref: (k*k*Cin, Ctp) bf16 (resident), b_ref: (1, Ctp) f32 (resident)
        # o_ref: (1, th, W, Ctp) f32
        h = pl.program_id(1)
        row0 = h * th                                   # first padded row used by this tile
        cols = []
        for dy in range(k):
            # Dynamic slice only on the major (row) axis; minor dims loaded in full.
            slab = x_ref[0, pl.ds(row0 + dy, th), :, :].astype(jnp.float32)   # (th, W+2p, Cin)
            for dx in range(k):
                cols.append(slab[:, dx:dx + w_out, :])                        # (th, W, Cin)
        # One wide patch matrix -> a single MXU dot per grid step.
        patch = jnp.concatenate(cols, axis=-1)                                # (th, W, k*k*Cin)
        patch = patch.reshape(th * w_out, k * k * cin).astype(jnp.bfloat16)
        y = jnp.dot(patch, w_ref[...], preferred_element_type=jnp.float32)    # (th*W, Ctp) f32
        y = y + b_ref[...]
        o_ref[...] = y.reshape(1, th, w_out, ctp).astype(o_ref.dtype)

    return kernel


def conv2d_bias_pallas(x_nhwc, w_oihw, bias, padding):
    """Conv2d(stride=1, 'same' padding) + bias.  x_nhwc f32, w_oihw torch OIHW, bias (Ct,)."""
    N, H, W, Cin = x_nhwc.shape
    Ct, Cin_w, kh, kw = w_oihw.shape
    assert Cin_w == Cin and kh == kw, (w_oihw.shape, Cin)
    k = kh
    assert k % 2 == 1, "even upsample_kernel not supported by this kernel"
    p = padding
    assert p == (k - 1) // 2

    # ---- row-tile choice: matmul M-dim ~2K rows, and at least 2 grid steps for v7x's 2 TCs.
    th = min(H, max(1, 2048 // max(W, 1)))
    if N * pl.cdiv(H, th) < 2 and H > 1:
        th = (H + 1) // 2
    ht = pl.cdiv(H, th)
    Hp = ht * th

    Ctp = _round_up(Ct, 128)                 # lane-dense output / full MXU columns
    K = k * k * Cin

    # Padded bf16 activations in NHWC (channels on the lane axis). Extra bottom rows (Hp-H) are
    # zeros and their outputs are sliced off below.
    xp = jnp.pad(x_nhwc, ((0, 0), (p, p + (Hp - H)), (p, p), (0, 0))).astype(jnp.bfloat16)

    # torch OIHW -> (dy, dx, ci)-major rows, zero-padded columns to Ctp, bf16.
    w_flat = jnp.transpose(w_oihw, (2, 3, 1, 0)).reshape(K, Ct)
    w_flat = jnp.pad(w_flat, ((0, 0), (0, Ctp - Ct))).astype(jnp.bfloat16)
    b_row = jnp.pad(bias, (0, Ctp - Ct)).reshape(1, Ctp).astype(jnp.float32)

    # VMEM budget (double-buffered blocks).  TODO(synk): halo-tile the H axis (pl.Element or a
    # manual DMA) instead of keeping the whole image resident once images get very large.
    vmem_need = 2 * ((Hp + 2 * p) * (W + 2 * p) * Cin * 2      # input image block (bf16)
                     + th * W * Ctp * 4                         # output block (f32)
                     + K * Ctp * 2 + Ctp * 4)                   # weight + bias
    assert vmem_need < 48 * 2 ** 20, f"image too large to keep resident in VMEM ({vmem_need} B)"

    kernel = _make_conv_kernel(k, th, W, Cin, Ctp)
    out = pl.pallas_call(
        kernel,
        out_shape=jax.ShapeDtypeStruct((N, Hp, W, Ctp), jnp.float32),
        grid=(N, ht),
        in_specs=[
            pl.BlockSpec((1, Hp + 2 * p, W + 2 * p, Cin), lambda n, h: (n, 0, 0, 0)),
            pl.BlockSpec((K, Ctp), lambda n, h: (0, 0)),     # weight resident
            pl.BlockSpec((1, Ctp), lambda n, h: (0, 0)),     # bias resident
        ],
        out_specs=pl.BlockSpec((1, th, W, Ctp), lambda n, h: (n, h, 0, 0)),
        compiler_params=pltpu.CompilerParams(
            dimension_semantics=("parallel", "parallel"),
            vmem_limit_bytes=int(min(60 * 2 ** 20, max(32 * 2 ** 20, 2 * vmem_need))),
        ),
    )(xp, w_flat, b_row)
    return out[:, :H, :, :Ct]


# ----------------------------- module forward --------------------------------
def pixel_shuffle_pack(x_nchw, w_oihw, bias, *, scale_factor, upsample_kernel):
    """Forward of PixelShufflePack: conv(upsample_kernel, pad=(k-1)//2) -> pixel_shuffle."""
    s = scale_factor
    # TODO(synk): keep the surrounding model in NHWC to drop this boundary transpose entirely.
    x = jnp.transpose(x_nchw, (0, 2, 3, 1)).astype(jnp.float32)      # NCHW -> NHWC
    pad = (upsample_kernel - 1) // 2
    y = conv2d_bias_pallas(x, w_oihw, bias, pad)                     # (N, H, W, Cout*s^2)
    N, H, W, Ct = y.shape
    Cout = Ct // (s * s)
    # Pixel-shuffle + NHWC->NCHW fused into one XLA transpose over the upscaled tensor.
    # torch semantics: out[n, c, h*s+i, w*s+j] = conv[n, c*s*s + i*s + j, h, w]
    y = y.reshape(N, H, W, Cout, s, s)
    y = jnp.transpose(y, (0, 3, 1, 4, 2, 5))                         # (N, Cout, H, s, W, s)
    return y.reshape(N, Cout, H * s, W * s)


def init_pixel_shuffle_pack(key, in_channels, out_channels, scale_factor, upsample_kernel):
    # default_init_weights(scale=1): kaiming_normal_(a=0, fan_in) on weight, zero bias.
    ct = out_channels * scale_factor * scale_factor
    fan_in = in_channels * upsample_kernel * upsample_kernel
    w = jax.random.normal(
        key, (ct, in_channels, upsample_kernel, upsample_kernel), jnp.float32
    ) * jnp.sqrt(2.0 / fan_in)
    b = jnp.zeros((ct,), jnp.float32)
    return w, b


if __name__ == "__main__":
    key = jax.random.PRNGKey(0)
    kx, kw = jax.random.split(key)

    # Small shapes consistent with the module: (n, c, h, w) input, scale=2, 3x3 conv.
    N, Cin, H, W = 2, 4, 16, 16
    Cout, scale, ksize = 4, 2, 3

    x = jax.random.normal(kx, (N, Cin, H, W), jnp.float32)
    w, b = init_pixel_shuffle_pack(kw, Cin, Cout, scale, ksize)

    fwd = jax.jit(functools.partial(pixel_shuffle_pack,
                                    scale_factor=scale, upsample_kernel=ksize))
    out = fwd(x, w, b)
    jax.block_until_ready(out)

    # Independent reference: XLA conv (f32, HIGHEST precision) on bf16-rounded inputs (the kernel
    # runs the MXU in bf16), plus torch-semantics pixel_shuffle.
    pad = (ksize - 1) // 2
    xr = x.astype(jnp.bfloat16).astype(jnp.float32)
    wr = w.astype(jnp.bfloat16).astype(jnp.float32)
    ref_conv = lax.conv_general_dilated(
        xr, wr, window_strides=(1, 1), padding=[(pad, pad), (pad, pad)],
        dimension_numbers=("NCHW", "OIHW", "NCHW"),
        precision=lax.Precision.HIGHEST) + b.reshape(1, -1, 1, 1)
    Nr, _, Hr, Wr = ref_conv.shape
    ref = ref_conv.reshape(Nr, Cout, scale, scale, Hr, Wr)
    ref = jnp.transpose(ref, (0, 1, 4, 2, 5, 3)).reshape(Nr, Cout, Hr * scale, Wr * scale)

    assert out.shape == (N, Cout, H * scale, W * scale), out.shape
    err = float(jnp.max(jnp.abs(out - ref)))
    assert err < 2e-3, f"max abs err vs reference: {err}"
    print("KERNEL_OK")
</pallas_src>

<mosaic_0001>
module attributes {stable_mosaic.version = 11 : i64} {
  func.func @kernel(%arg0: i32, %arg1: i32, %arg2: memref<1x18x18x4xbf16, #tpu.memory_space<vmem>>, %arg3: memref<36x128xbf16, #tpu.memory_space<vmem>>, %arg4: memref<1x128xf32, #tpu.memory_space<vmem>>, %arg5: memref<1x16x16x128xf32, #tpu.memory_space<vmem>>) attributes {dimension_semantics = [#tpu.dimension_semantics<parallel>, #tpu.dimension_semantics<parallel>], iteration_bounds = array<i64: 2, 1>, scalar_prefetch = 0 : i64, scratch_operands = 0 : i64, tpu.core_type = #tpu.core_type<tc>, window_params = [{transform_indices = @transform_0, window_bounds = array<i64: 1, 18, 18, 4>}, {pipeline_mode = #tpu.pipeline_mode<synchronous>, transform_indices = @transform_1, window_bounds = array<i64: 36, 128>}, {pipeline_mode = #tpu.pipeline_mode<synchronous>, transform_indices = @transform_2, window_bounds = array<i64: 1, 128>}, {transform_indices = @transform_3, window_bounds = array<i64: 1, 16, 16, 128>}]} {
    %c16_i32 = arith.constant 16 : i32
    %0 = arith.muli %arg1, %c16_i32 : i32
    %c0_i32 = arith.constant 0 : i32
    %1 = arith.addi %0, %c0_i32 : i32
    %c0 = arith.constant 0 : index
    %2 = arith.index_cast %1 : i32 to index
    %c0_0 = arith.constant 0 : index
    %c0_1 = arith.constant 0 : index
    %3 = vector.load %arg2[%c0, %2, %c0_0, %c0_1] : memref<1x18x18x4xbf16, #tpu.memory_space<vmem>>, vector<1x16x18x4xbf16>
    %4 = vector.shape_cast %3 : vector<1x16x18x4xbf16> to vector<16x18x4xbf16>
    %5 = arith.extf %4 : vector<16x18x4xbf16> to vector<16x18x4xf32>
    %6 = vector.extract_strided_slice %5 {offsets = [0, 0, 0], sizes = [16, 16, 4], strides = [1, 1, 1]} : vector<16x18x4xf32> to vector<16x16x4xf32>
    %7 = vector.extract_strided_slice %5 {offsets = [0, 1, 0], sizes = [16, 16, 4], strides = [1, 1, 1]} : vector<16x18x4xf32> to vector<16x16x4xf32>
    %8 = vector.extract_strided_slice %5 {offsets = [0, 2, 0], sizes = [16, 16, 4], strides = [1, 1, 1]} : vector<16x18x4xf32> to vector<16x16x4xf32>
    %c1_i32 = arith.constant 1 : i32
    %9 = arith.addi %0, %c1_i32 : i32
    %c0_2 = arith.constant 0 : index
    %10 = arith.index_cast %9 : i32 to index
    %c0_3 = arith.constant 0 : index
    %c0_4 = arith.constant 0 : index
    %11 = vector.load %arg2[%c0_2, %10, %c0_3, %c0_4] : memref<1x18x18x4xbf16, #tpu.memory_space<vmem>>, vector<1x16x18x4xbf16>
    %12 = vector.shape_cast %11 : vector<1x16x18x4xbf16> to vector<16x18x4xbf16>
    %13 = arith.extf %12 : vector<16x18x4xbf16> to vector<16x18x4xf32>
    %14 = vector.extract_strided_slice %13 {offsets = [0, 0, 0], sizes = [16, 16, 4], strides = [1, 1, 1]} : vector<16x18x4xf32> to vector<16x16x4xf32>
    %15 = vector.extract_strided_slice %13 {offsets = [0, 1, 0], sizes = [16, 16, 4], strides = [1, 1, 1]} : vector<16x18x4xf32> to vector<16x16x4xf32>
    %16 = vector.extract_strided_slice %13 {offsets = [0, 2, 0], sizes = [16, 16, 4], strides = [1, 1, 1]} : vector<16x18x4xf32> to vector<16x16x4xf32>
    %c2_i32 = arith.constant 2 : i32
    %17 = arith.addi %0, %c2_i32 : i32
    %c0_5 = arith.constant 0 : index
    %18 = arith.index_cast %17 : i32 to index
    %c0_6 = arith.constant 0 : index
    %c0_7 = arith.constant 0 : index
    %19 = vector.load %arg2[%c0_5, %18, %c0_6, %c0_7] : memref<1x18x18x4xbf16, #tpu.memory_space<vmem>>, vector<1x16x18x4xbf16>
    %20 = vector.shape_cast %19 : vector<1x16x18x4xbf16> to vector<16x18x4xbf16>
    %21 = arith.extf %20 : vector<16x18x4xbf16> to vector<16x18x4xf32>
    %22 = vector.extract_strided_slice %21 {offsets = [0, 0, 0], sizes = [16, 16, 4], strides = [1, 1, 1]} : vector<16x18x4xf32> to vector<16x16x4xf32>
    %23 = vector.extract_strided_slice %21 {offsets = [0, 1, 0], sizes = [16, 16, 4], strides = [1, 1, 1]} : vector<16x18x4xf32> to vector<16x16x4xf32>
    %24 = vector.extract_strided_slice %21 {offsets = [0, 2, 0], sizes = [16, 16, 4], strides = [1, 1, 1]} : vector<16x18x4xf32> to vector<16x16x4xf32>
    %25 = tpu.concatenate %6, %7, %8, %14, %15, %16, %22, %23, %24 in 2 : vector<16x16x4xf32>, vector<16x16x4xf32>, vector<16x16x4xf32>, vector<16x16x4xf32>, vector<16x16x4xf32>, vector<16x16x4xf32>, vector<16x16x4xf32>, vector<16x16x4xf32>, vector<16x16x4xf32> -> vector<16x16x36xf32>
    %26 = vector.shape_cast %25 : vector<16x16x36xf32> to vector<256x36xf32>
    %27 = arith.truncf %26 : vector<256x36xf32> to vector<256x36xbf16>
    %c0_8 = arith.constant 0 : index
    %c0_9 = arith.constant 0 : index
    %28 = vector.load %arg3[%c0_8, %c0_9] : memref<36x128xbf16, #tpu.memory_space<vmem>>, vector<36x128xbf16>
    %cst = arith.constant dense<0.000000e+00> : vector<256x128xf32>
    %29 = tpu.matmul %27, %28, %cst {dimension_numbers = #tpu.dot_dimension_numbers<[1], [0], [0], [1], [0, 0, 1, 1], [], []>} : vector<256x36xbf16>, vector<36x128xbf16>, vector<256x128xf32> -> vector<256x128xf32>
    %c0_10 = arith.constant 0 : index
    %c0_11 = arith.constant 0 : index
    %30 = vector.load %arg4[%c0_10, %c0_11] : memref<1x128xf32, #tpu.memory_space<vmem>>, vector<1x128xf32>
    %31 = vector.broadcast %30 : vector<1x128xf32> to vector<256x128xf32>
    %32 = arith.addf %29, %31 : vector<256x128xf32>
    %33 = vector.shape_cast %32 : vector<256x128xf32> to vector<1x16x16x128xf32>
    %c0_12 = arith.constant 0 : index
    %c0_13 = arith.constant 0 : index
    %c0_14 = arith.constant 0 : index
    %c0_15 = arith.constant 0 : index
    %34 = vector.load %arg5[%c0_12, %c0_13, %c0_14, %c0_15] : memref<1x16x16x128xf32, #tpu.memory_space<vmem>>, vector<1x16x16x128xf32>
    tpu.vector_store %arg5[%c0_12, %c0_13, %c0_14, %c0_15], %33 {strides = array<i32>} : memref<1x16x16x128xf32, #tpu.memory_space<vmem>>, vector<1x16x16x128xf32>,
    return
  }
  func.func @transform_0(%arg0: i32, %arg1: i32) -> (i32, i32, i32, i32) {
    %c0_i32 = arith.constant 0 : i32
    %c0_i32_0 = arith.constant 0 : i32
    %c0_i32_1 = arith.constant 0 : i32
    %c0_i32_2 = arith.constant 0 : i32
    return %arg0, %c0_i32, %c0_i32_0, %c0_i32_1 : i32, i32, i32, i32
  }
  func.func @transform_1(%arg0: i32, %arg1: i32) -> (i32, i32) {
    %c0_i32 = arith.constant 0 : i32
    %c0_i32_0 = arith.constant 0 : i32
    %c0_i32_1 = arith.constant 0 : i32
    return %c0_i32, %c0_i32_0 : i32, i32
  }
  func.func @transform_2(%arg0: i32, %arg1: i32) -> (i32, i32) {
    %c0_i32 = arith.constant 0 : i32
    %c0_i32_0 = arith.constant 0 : i32
    %c0_i32_1 = arith.constant 0 : i32
    return %c0_i32, %c0_i32_0 : i32, i32
  }
  func.func @transform_3(%arg0: i32, %arg1: i32) -> (i32, i32, i32, i32) {
    %c0_i32 = arith.constant 0 : i32
    %c0_i32_0 = arith.constant 0 : i32
    %c0_i32_1 = arith.constant 0 : i32
    return %arg0, %arg1, %c0_i32, %c0_i32_0 : i32, i32, i32, i32
  }
}

</mosaic_0001>

<bundles_post_ra>
// kernel: pixel_shuffle_pack.1
= control target key start
LH: loop header
LB: loop body
LE: loop exit
PB: predicated region body
PF: predicated region fallthrough
CT: control target
= control target key end

     0   :  { %s3580_s12 = smov 0   ;;  %s3582_s13 = smov 0   ;;  %s6012_s0 = inlined_call_operand.vmem [shape: bf16[2,18,18,4], index: 0, kind: input, shape index: {}]   ;;  %s6013_s1 = inlined_call_operand.vmem [shape: bf16[36,128], index: 1, kind: input, shape index: {}]   ;;  %s6014_s2 = inlined_call_operand.vmem [shape: f32[1,128], index: 2, kind: input, shape index: {}]   ;;  %s6015_s3 = inlined_call_operand.vmem [shape: f32[2,16,16,128], index: 3, kind: output, shape index: {}]  }
   0x1   :  { %s3584_s14 = smov 0  }
   0x2 LB: > { %s25_s15 = sadd.s32 1, %s3546_s13  ;;  %p2545_p0 = scmp.ge.s32.totalorder %s3550_s14, 1  ;;  %s3550_s14 = sphi %s3584_s14, %s13_s14   ;;  %s3546_s13 = sphi %s3582_s13, %s6458_s13   ;;  %s3542_s12 = sphi %s3580_s12, %s6457_s12  }
   0x3   : > { %p27_p1 = scmp.ge.s32.totalorder %s25_s15, 2  ;;  %p151_p2 = scmp.lt.s32.totalorder %s3550_s14, 3 }
   0x5   : > { %s6460_s15 = smov (%p27_p1, %s25_s15), 0  ;;  %p152_p3 = pnand %p2545_p0, %p151_p2 }
   0x7   : > { %155 = sbr.rel (%p152_p3) target bundleno = 611 (0x263), region = 32 }
   0xc   : > { %p180_p4 = scmp.lt.s32.totalorder %s3542_s12, 1  ;;  %vm545_vm0 = vcmask 1046528   ;;  %s3552_s20 = smov 4   ;;  %vm722_vm1 = vcmask 1045504   ;;  %vm1891_vm2 = vcmask 31744   ;;  %vm1924_vm3 = vcmask 64512  }
   0xd   : > { %s3553_s21 = smov 8   ;;  %s3554_s22 = smov 12   ;;  %vm1957_vm4 = vcmask 97280   ;;  %vm1990_vm5 = vcmask 130048   ;;  %vm2247_vm6 = vcmask 1041408   ;;  %vm2023_vm7 = vcmask 162816  }
   0xe   : > { %s6462_s12 = smov (!%p180_p4, %s3542_s12), 1  ;;  %s3555_s23 = smov 16   ;;  %vm2056_vm8 = vcmask 195584   ;;  %vm2089_vm9 = vcmask 228352   ;;  %vm2122_vm10 = vcmask 261120   ;;  %vm2198_vm11 = vcmask 293888  }
   0xf   : > { %s2852_s16 = smul.u32 216, %s6462_s12  ;;  %s3556_s24 = smov 20  }
  0x10   : > { %s3557_s25 = smov 24   ;;  %s3558_s26 = smov 28  }
  0x11   : > { %s3604_s19 = scalar_lea.vmem %s6012_s0, %s2852_s16  ;;  %s3559_s27 = smov 32  }
  0x12   : > { %v2764_v0 = vld [vmem:[%s3604_s19 + $0x18] sm:$0xff]   ;;  %v3608_v1 = vld [vmem:[%s3604_s19 + $0x20] sm:$0x1]  ;;  %v3619_v7 = vld [vmem:[%s3604_s19 + $0x8] sm:$0x1]  ;;  %s2667_s7 = sshll.u32 %s6462_s12, 8 }
  0x13   : > { %v2669_v2 = vld [vmem:[%s3604_s19] sm:$0xff]   ;;  %v3611_v3 = vunpack.c.l.bf16 %v2764_v0  ;;  %v3613_v4 = vunpack.c.h.bf16 %v2764_v0  ;;  %v6023_v5 = vunpack.c.l.bf16 %v3608_v1  ;;  %v3623_v9 = vld [vmem:[%s3604_s19 + $0x2c] sm:$0x1]  ;;  %v6025_v11 = vunpack.c.l.bf16 %v3619_v7  ;;  %v3646_v23 = vld [vmem:[%s3604_s19 + $0x14] sm:$0x1]  ;;  %s5937_s16 = scalar_lea.vmem %s6015_s3, %s2667_s7 }
  0x14   : > { %v3616_v6 = vunpack.c.l.bf16 %v2669_v2  ;;  %v210_v8 = vld [vmem:[%s3604_s19 + $0x24] sm:$0xff]   ;;  %v3625_v10 = vunpack.c.h.bf16 %v2669_v2  ;;  %v204_v14 = vld [vmem:[%s3604_s19 + $0xc] sm:$0xff]   ;;  %v6024_v21 = vunpack.c.l.bf16 %v3623_v9  ;;  %v216_v28 = vld [vmem:[%s3604_s19 + $0x3c] sm:$0xff]   ;;  %v6026_v37 = vunpack.c.l.bf16 %v3646_v23 }
  0x15   : > { %v3628_v12 = vunpack.c.l.bf16 %v210_v8  ;;  %v3630_v13 = vunpack.c.h.bf16 %v210_v8  ;;  %v556_v15 = vrot.slane %v3611_v3, 1  ;;  %v3635_v16 = vrot.slane %v3613_v4, 1  ;;  %v3664_v33 = vld [vmem:[%s3604_s19 + $0x44] sm:$0x1]  ;;  %v2765_v38 = vld [vmem:[%s3604_s19 + $0x30] sm:$0xff]   ;;  %v2766_v58 = vld [vmem:[%s3604_s19 + $0x48] sm:$0xff]  }
  0x16   : > { %v559_v17 = vrot.slane %v6023_v5, 1  ;;  %v546_v18 = vrot.slane %v3616_v6, 1  ;;  %v547_v19 = vrot.slane %v3625_v10, 1  ;;  %v549_v20 = vrot.slane %v6025_v11, 1  ;;  %v3679_v43 = vld [vmem:[%s3604_s19 + $0x38] sm:$0x1] }
  0x17   : > { %6141 = vst [vmem:[#allocation2_spill] sm:$0xff] %v3635_v16  ;;  %v561_v22 = vrot.slane %v3628_v12, 1  ;;  %v3650_v24 = vsel %vm545_vm0, %v556_v15, %v3635_v16  ;;  %v562_v26 = vrot.slane %v3630_v13, 1  ;;  %v3655_v27 = vunpack.c.l.bf16 %v204_v14  ;;  %v222_v52 = vld [vmem:[%s3604_s19 + $0x54] sm:$0xff]   ;;  %v3699_v57 = vld [vmem:[%s3604_s19 + $0x5c] sm:$0x1] }
  0x18   : > { %6142 = vst [vmem:[#allocation3_spill] sm:$0xff] %v3650_v24  ;;  %v560_v25 = vsel %vm545_vm0, %v3635_v16, %v559_v17  ;;  %v548_v30 = vsel %vm545_vm0, %v546_v18, %v547_v19  ;;  %v550_v31 = vsel %vm545_vm0, %v547_v19, %v549_v20  ;;  %v564_v32 = vrot.slane %v6024_v21, 1  ;;  %v228_v20 = vld [vmem:[%s3604_s19 + $0x6c] sm:$0xff]   ;;  %v246_v21 = vld [vmem:[%s3604_s19 + $0xb4] sm:$0xff]  }
  0x19   : > { %6143 = vst [vmem:[#allocation4_spill] sm:$0xff] %v3655_v27  ;;  %v2895_v29 = vpack.i.bf16 %v560_v25, %v3650_v24  ;;  %v2885_v34 = vpack.i.bf16 %v550_v31, %v548_v30  ;;  %v563_v35 = vsel %vm545_vm0, %v561_v22, %v562_v26  ;;  %v3667_v36 = vunpack.c.h.bf16 %v204_v14  ;;  %v3716_v14 = vld [vmem:[%s3604_s19 + $0x50] sm:$0x1]  ;;  %v2767_v30 = vld [vmem:[%s3604_s19 + $0x60] sm:$0xff]  }
  0x1a   : > { %v565_v39 = vsel %vm545_vm0, %v562_v26, %v564_v32  ;;  %v551_v40 = vrot.slane %v3655_v27, 1  ;;  %v3674_v41 = vunpack.c.l.bf16 %v216_v28  ;;  %v3676_v42 = vunpack.c.h.bf16 %v216_v28 }
  0x1b   : > { %6144 = vst [vmem:[#allocation5_spill] sm:$0xff] %v3667_v36  ;;  %2896 = vrot.lane.b32.xlu1 %v2895_v29, %s3552_s20  ;;  %2886 = vrot.lane.b32.xlu0 %v2885_v34, %s3552_s20  ;;  %v2900_v44 = vpack.i.bf16 %v565_v39, %v563_v35  ;;  %v552_v45 = vrot.slane %v3667_v36, 1  ;;  %v554_v46 = vrot.slane %v6026_v37, 1  ;;  %v6021_v47 = vunpack.c.l.bf16 %v3664_v33  ;;  %v3734_v29 = vld [vmem:[%s3604_s19 + $0x74] sm:$0x1] }
  0x1c   : > { %6145 = vst [vmem:[#allocation6_spill] sm:$0xff] %v3674_v41  ;;  %6146 = vst [vmem:[#allocation7_spill] sm:$0xff] %v3676_v42  ;;  %v571_v48 = vrot.slane %v3674_v41, 1  ;;  %v572_v49 = vrot.slane %v3676_v42, 1  ;;  %v3688_v50 = vunpack.c.l.bf16 %v2765_v38  ;;  %v3690_v51 = vunpack.c.h.bf16 %v2765_v38 }
  0x1d   : > { %v553_v53 = vsel %vm545_vm0, %v551_v40, %v552_v45  ;;  %v555_v54 = vsel %vm545_vm0, %v552_v45, %v554_v46  ;;  %v574_v55 = vrot.slane %v6021_v47, 1  ;;  %v6020_v56 = vunpack.c.l.bf16 %v3679_v43  ;;  %v3752_v45 = vld [vmem:[%s3604_s19 + $0x68] sm:$0x1] }
  0x1e   : > { %6147 = vst [vmem:[#allocation8_spill] sm:$0xff] %v3688_v50  ;;  %6148 = vst [vmem:[#allocation9_spill] sm:$0xff] %v3690_v51  ;;  %v2890_v59 = vpack.i.bf16 %v555_v54, %v553_v53  ;;  %v573_v60 = vsel %vm545_vm0, %v571_v48, %v572_v49  ;;  %v566_v61 = vrot.slane %v3688_v50, 1  ;;  %v3706_v62 = vrot.slane %v3690_v51, 1  ;;  %v234_v53 = vld [vmem:[%s3604_s19 + $0x84] sm:$0xff]  }
  0x1f   : > { %2901 = vrot.lane.b32.xlu1 %v2900_v44, %s3552_s20  ;;  %v575_v63 = vsel %vm545_vm0, %v572_v49, %v574_v55  ;;  %v569_v0 = vrot.slane %v6020_v56, 1  ;;  %v3711_v2 = vunpack.c.l.bf16 %v222_v52  ;;  %v3713_v8 = vunpack.c.h.bf16 %v222_v52 }
  0x20   : > { %6149 = vst [vmem:[#allocation10_spill] sm:$0xff] %v3706_v62  ;;  %2891 = vrot.lane.b32.xlu0 %v2890_v59, %s3552_s20  ;;  %v2910_v15 = vpack.i.bf16 %v575_v63, %v573_v60  ;;  %v3721_v17 = vsel %vm545_vm0, %v566_v61, %v3706_v62  ;;  %v6019_v18 = vunpack.c.l.bf16 %v3699_v57  ;;  %v3724_v19 = vunpack.c.l.bf16 %v2766_v58 }
  0x21   : > { %6150 = vst [vmem:[#allocation11_spill] sm:$0xff] %v3711_v2  ;;  %6151 = vst [vmem:[#allocation12_spill] sm:$0xff] %v3713_v8  ;;  %v570_v22 = vsel %vm545_vm0, %v3706_v62, %v569_v0  ;;  %v581_v25 = vrot.slane %v3711_v2, 1  ;;  %v582_v26 = vrot.slane %v3713_v8, 1  ;;  %v3731_v28 = vunpack.c.h.bf16 %v2766_v58 }
  0x22   : > { %6152 = vst [vmem:[#allocation13_spill] sm:$0xff] %v3721_v17  ;;  %6153 = vst [vmem:[#allocation14_spill] sm:$0xff] %v3724_v19  ;;  %v2905_v31 = vpack.i.bf16 %v570_v22, %v3721_v17  ;;  %v584_v32 = vrot.slane %v6019_v18, 1  ;;  %v6018_v34 = vunpack.c.l.bf16 %v3716_v14  ;;  %v576_v35 = vrot.slane %v3724_v19, 1 }
  0x23   : > { %6154 = vst [vmem:[#allocation15_spill] sm:$0xff] %v3731_v28  ;;  %2911 = vrot.lane.b32.xlu1 %v2910_v15, %s3552_s20  ;;  %v583_v38 = vsel %vm545_vm0, %v581_v25, %v582_v26  ;;  %v3745_v39 = vrot.slane %v3731_v28, 1  ;;  %v3747_v40 = vunpack.c.l.bf16 %v228_v20  ;;  %v3749_v44 = vunpack.c.h.bf16 %v228_v20  ;;  %v3776_v15 = vld [vmem:[%s3604_s19 + $0x8c] sm:$0x1]  ;;  %v2768_v20 = vld [vmem:[%s3604_s19 + $0x78] sm:$0xff]  }
  0x24   : > { %2906 = vrot.lane.b32.xlu0 %v2905_v31, %s3552_s20  ;;  %v585_v46 = vsel %vm545_vm0, %v582_v26, %v584_v32  ;;  %v579_v48 = vrot.slane %v6018_v34, 1  ;;  %v6017_v49 = vunpack.c.l.bf16 %v3734_v29  ;;  %v3759_v52 = vunpack.c.l.bf16 %v2767_v30 }
  0x25   : > { %6155 = vst [vmem:[#allocation16_spill] sm:$0xff] %v3745_v39  ;;  %6156 = vst [vmem:[#allocation17_spill] sm:$0xff] %v3747_v40  ;;  %v2920_v54 = vpack.i.bf16 %v585_v46, %v583_v38  ;;  %v3764_v55 = vsel %vm545_vm0, %v576_v35, %v3745_v39  ;;  %v591_v58 = vrot.slane %v3747_v40, 1  ;;  %v592_v59 = vrot.slane %v3749_v44, 1  ;;  %v3794_v46 = vld [vmem:[%s3604_s19 + $0x80] sm:$0x1] }
  0x26   : > { %6157 = vst [vmem:[#allocation18_spill] sm:$0xff] %v3749_v44  ;;  %6158 = vst [vmem:[#allocation19_spill] sm:$0xff] %v3759_v52  ;;  %v580_v60 = vsel %vm545_vm0, %v3745_v39, %v579_v48  ;;  %v594_v61 = vrot.slane %v6017_v49, 1  ;;  %v3772_v63 = vunpack.c.h.bf16 %v2767_v30  ;;  %v6016_v0 = vunpack.c.l.bf16 %v3752_v45 }
  0x27   : > { %6159 = vst [vmem:[#allocation20_spill] sm:$0xff] %v3764_v55  ;;  %2921 = vrot.lane.b32.xlu1 %v2920_v54, %s3552_s20  ;;  %v2915_v22 = vpack.i.bf16 %v580_v60, %v3764_v55  ;;  %v593_v25 = vsel %vm545_vm0, %v591_v58, %v592_v59  ;;  %v586_v26 = vrot.slane %v3759_v52, 1  ;;  %v3783_v31 = vunpack.c.l.bf16 %v234_v53  ;;  %v3872_v55 = vld [vmem:[%s3604_s19 + $0xb0] sm:$0x1] }
  0x28   : > { %6160 = vst [vmem:[#allocation21_spill] sm:$0xff] %v3772_v63  ;;  %v595_v30 = vsel %vm545_vm0, %v592_v59, %v594_v61  ;;  %v3787_v32 = vrot.slane %v3772_v63, 1  ;;  %v589_v35 = vrot.slane %v6016_v0, 1  ;;  %v3791_v38 = vunpack.c.h.bf16 %v234_v53  ;;  %v240_v59 = vld [vmem:[%s3604_s19 + $0x9c] sm:$0xff]  }
  0x29   : > { %6161 = vst [vmem:[#allocation22_spill] sm:$0xff] %v3783_v31  ;;  %2916 = vrot.lane.b32.xlu0 %v2915_v22, %s3552_s20  ;;  %v2930_v48 = vpack.i.bf16 %v595_v30, %v593_v25  ;;  %v6022_v54 = vunpack.c.l.bf16 %v3776_v15  ;;  %v601_v58 = vrot.slane %v3783_v31, 1  ;;  %v3799_v60 = vunpack.c.l.bf16 %v2768_v20  ;;  %v3812_v22 = vld [vmem:[%s3604_s19 + $0xa4] sm:$0x1]  ;;  %v2769_v25 = vld [vmem:[%s3604_s19 + $0x90] sm:$0xff]  }
  0x2a   : > { %6162 = vst [vmem:[#allocation23_spill] sm:$0xff] %v3787_v32  ;;  %6163 = vst [vmem:[#allocation24_spill] sm:$0xff] %v3791_v38  ;;  %v3804_v61 = vsel %vm545_vm0, %v586_v26, %v3787_v32  ;;  %v590_v53 = vsel %vm545_vm0, %v3787_v32, %v589_v35  ;;  %v602_v0 = vrot.slane %v3791_v38, 1  ;;  %v3809_v49 = vunpack.c.h.bf16 %v2768_v20 }
  0x2b   : > { %6164 = vst [vmem:[#allocation25_spill] sm:$0xff] %v3799_v60  ;;  %6165 = vst [vmem:[#allocation26_spill] sm:$0xff] %v3804_v61  ;;  %2931 = vrot.lane.b32.xlu1 %v2930_v48, %s3552_s20  ;;  %v2925_v30 = vpack.i.bf16 %v590_v53, %v3804_v61  ;;  %v604_v34 = vrot.slane %v6022_v54, 1  ;;  %v6028_v26 = vunpack.c.l.bf16 %v3794_v46  ;;  %v596_v18 = vrot.slane %v3799_v60, 1  ;;  %v3830_v48 = vld [vmem:[%s3604_s19 + $0x98] sm:$0x1] }
  0x2c   : > { %6166 = vst [vmem:[#allocation27_spill] sm:$0xff] %v3809_v49  ;;  %v603_v35 = vsel %vm545_vm0, %v601_v58, %v602_v0  ;;  %v3823_v20 = vrot.slane %v3809_v49, 1  ;;  %v3825_v56 = vunpack.c.l.bf16 %v240_v59  ;;  %v3827_v47 = vunpack.c.h.bf16 %v240_v59 }
  0x2d   : > { %2926 = vrot.lane.b32.xlu0 %v2925_v30, %s3552_s20  ;;  %v605_v53 = vsel %vm545_vm0, %v602_v0, %v604_v34  ;;  %v599_v54 = vrot.slane %v6028_v26, 1  ;;  %v6032_v58 = vunpack.c.l.bf16 %v3812_v22  ;;  %v3837_v5 = vunpack.c.l.bf16 %v2769_v25 }
  0x2e   : > { %6167 = vst [vmem:[#allocation28_spill] sm:$0xff] %v3823_v20  ;;  %6168 = vst [vmem:[#allocation29_spill] sm:$0xff] %v3825_v56  ;;  %v2940_v11 = vpack.i.bf16 %v605_v53, %v603_v35  ;;  %v3842_v59 = vsel %vm545_vm0, %v596_v18, %v3823_v20  ;;  %v611_v37 = vrot.slane %v3825_v56, 1  ;;  %v612_v32 = vrot.slane %v3827_v47, 1  ;;  %v3854_v35 = vld [vmem:[%s3604_s19 + $0xbc] sm:$0x1] }
  0x2f   : > { %6169 = vst [vmem:[#allocation30_spill] sm:$0xff] %v3827_v47  ;;  %6170 = vst [vmem:[#allocation31_spill] sm:$0xff] %v3837_v5  ;;  %v600_v34 = vsel %vm545_vm0, %v3823_v20, %v599_v54  ;;  %v614_v0 = vrot.slane %v6032_v58, 1  ;;  %v3850_v30 = vunpack.c.h.bf16 %v2769_v25  ;;  %v6039_v26 = vunpack.c.l.bf16 %v3830_v48  ;;  %v2770_v53 = vld [vmem:[%s3604_s19 + $0xa8] sm:$0xff]  }
  0x30   : > { %6171 = vst [vmem:[#allocation32_spill] sm:$0xff] %v3842_v59  ;;  %2941 = vrot.lane.b32.xlu1 %v2940_v11, %s3552_s20  ;;  %v2935_v18 = vpack.i.bf16 %v600_v34, %v3842_v59  ;;  %v613_v61 = vsel %vm545_vm0, %v611_v37, %v612_v32  ;;  %v606_v24 = vrot.slane %v3837_v5, 1  ;;  %v3861_v16 = vunpack.c.l.bf16 %v246_v21 }
  0x31   : > { %6172 = vst [vmem:[#allocation33_spill] sm:$0xff] %v3850_v30  ;;  %v615_v54 = vsel %vm545_vm0, %v612_v32, %v614_v0  ;;  %v3865_v25 = vrot.slane %v3850_v30, 1  ;;  %v609_v58 = vrot.slane %v6039_v26, 1  ;;  %v3869_v20 = vunpack.c.h.bf16 %v246_v21 }
  0x32   : > { %6173 = vst [vmem:[#allocation34_spill] sm:$0xff] %v3861_v16  ;;  %2936 = vrot.lane.b32.xlu0 %v2935_v18, %s3552_s20  ;;  %v2950_v11 = vpack.i.bf16 %v615_v54, %v613_v61  ;;  %v6043_v37 = vunpack.c.l.bf16 %v3854_v35  ;;  %v621_v34 = vrot.slane %v3861_v16, 1  ;;  %v3877_v59 = vunpack.c.l.bf16 %v2770_v53 }
  0x33   : > { %6174 = vst [vmem:[#allocation35_spill] sm:$0xff] %v3865_v25  ;;  %6175 = vst [vmem:[#allocation36_spill] sm:$0xff] %v3869_v20  ;;  %v3881_v32 = vsel %vm545_vm0, %v606_v24, %v3865_v25  ;;  %v610_v0 = vsel %vm545_vm0, %v3865_v25, %v609_v58  ;;  %v622_v21 = vrot.slane %v3869_v20, 1  ;;  %v3886_v26 = vunpack.c.h.bf16 %v2770_v53 }
  0x34   : > { %6176 = vst [vmem:[#allocation37_spill] sm:$0xff] %v3877_v59  ;;  %6177 = vst [vmem:[#allocation38_spill] sm:$0xff] %v3881_v32  ;;  %2951 = vrot.lane.b32.xlu1 %v2950_v11, %s3552_s20  ;;  %v2945_v61 = vpack.i.bf16 %v610_v0, %v3881_v32  ;;  %v624_v18 = vrot.slane %v6043_v37, 1  ;;  %v6050_v54 = vunpack.c.l.bf16 %v3872_v55  ;;  %v616_v39 = vrot.slane %v3877_v59, 1 }
  0x35   : > { %6178 = vst [vmem:[#allocation39_spill] sm:$0xff] %v3886_v26  ;;  %v623_v24 = vsel %vm545_vm0, %v621_v34, %v622_v21  ;;  %v3896_v17 = vrot.slane %v3886_v26, 1  ;;  %v728_v58 = vrot.slane %v3655_v27, 2  ;;  %v729_v53 = vrot.slane %v3667_v36, 2 }
  0x36   : > { %2946 = vrot.lane.b32.xlu0 %v2945_v61, %s3552_s20  ;;  %v625_v11 = vsel %vm545_vm0, %v622_v21, %v624_v18  ;;  %v619_v0 = vrot.slane %v6050_v54, 1  ;;  %v6180_v37 = vunpack.c.l.bf16 %v3646_v23  ;;  %v723_v25 = vrot.slane %v3616_v6, 2 }
  0x37   : > { %6179 = vst [vmem:[#allocation40_spill] sm:$0xff] %v3896_v17  ;;  %v2960_v34 = vpack.i.bf16 %v625_v11, %v623_v24  ;;  %v3909_v62 = vsel %vm545_vm0, %v616_v39, %v3896_v17  ;;  %v730_v27 = vsel %vm722_vm1, %v728_v58, %v729_v53  ;;  %v724_v36 = vrot.slane %v3625_v10, 2 }
  0x38   : > { %v731_v32 = vrot.slane %v6180_v37, 2  ;;  %6181 = vst [vmem:[#allocation41_spill] sm:$0xff] %v3909_v62  ;;  %v620_v21 = vsel %vm545_vm0, %v3896_v17, %v619_v0  ;;  %v6182_v18 = vunpack.c.l.bf16 %v3619_v7  ;;  %v738_v37 = vrot.slane %v3628_v12, 2 }
  0x39   : > { %2961 = vrot.lane.b32.xlu1 %v2960_v34, %s3552_s20  ;;  %v2955_v24 = vpack.i.bf16 %v620_v21, %v3909_v62  ;;  %v725_v11 = vsel %vm722_vm1, %v723_v25, %v724_v36  ;;  %v739_v58 = vrot.slane %v3630_v13, 2  ;;  %v6183_v0 = vunpack.c.l.bf16 %v3623_v9 }
  0x3a   : > { %v732_v61 = vsel %vm722_vm1, %v729_v53, %v731_v32  ;;  %v726_v23 = vrot.slane %v6182_v18, 2  ;;  %v733_v32 = vrot.slane %v3611_v3, 2  ;;  %v3928_v7 = vrot.slane %v3613_v4, 2 }
  0x3b   : > { %v2970_v39 = vpack.i.bf16 %v732_v61, %v730_v27  ;;  %v741_v17 = vrot.slane %v6183_v0, 2  ;;  %2956 = vrot.lane.b32.xlu0 %v2955_v24, %s3552_s20  ;;  %v740_v34 = vsel %vm722_vm1, %v738_v37, %v739_v58  ;;  %v6184_v27 = vunpack.c.l.bf16 %v3608_v1 }
  0x3c   : > { %v727_v54 = vsel %vm722_vm1, %v724_v36, %v726_v23  ;;  %v748_v21 = vrot.slane %v3674_v41, 2  ;;  %v3938_v9 = vsel %vm722_vm1, %v733_v32, %v3928_v7  ;;  %v749_v61 = vrot.slane %v3676_v42, 2 }
  0x3d   : > { %v2965_v53 = vpack.i.bf16 %v727_v54, %v725_v11  ;;  %v736_v25 = vrot.slane %v6184_v27, 2  ;;  %v742_v36 = vsel %vm722_vm1, %v739_v58, %v741_v17  ;;  %v6185_v18 = vunpack.c.l.bf16 %v3664_v33  ;;  %2971 = vrot.lane.b32.xlu1 %v2970_v39, %s3553_s21 }
  0x3e   : > { %v2980_v54 = vpack.i.bf16 %v742_v36, %v740_v34  ;;  %v743_v37 = vrot.slane %v3688_v50, 2  ;;  %v3948_v17 = vrot.slane %v3690_v51, 2  ;;  %v750_v24 = vsel %vm722_vm1, %v748_v21, %v749_v61 }
  0x3f   : > { %v751_v23 = vrot.slane %v6185_v18, 2  ;;  %v737_v1 = vsel %vm722_vm1, %v3928_v7, %v736_v25  ;;  %v6186_v58 = vunpack.c.l.bf16 %v3679_v43  ;;  %2966 = vrot.lane.b32.xlu0 %v2965_v53, %s3553_s21  ;;  %v758_v32 = vrot.slane %v3711_v2, 2 }
  0x40   : > { %v2975_v39 = vpack.i.bf16 %v737_v1, %v3938_v9  ;;  %v3958_v0 = vsel %vm722_vm1, %v743_v37, %v3948_v17  ;;  %v759_v34 = vrot.slane %v3713_v8, 2  ;;  %v6187_v25 = vunpack.c.l.bf16 %v3699_v57 }
  0x41   : > { %v752_v11 = vsel %vm722_vm1, %v749_v61, %v751_v23  ;;  %v746_v33 = vrot.slane %v6186_v58, 2  ;;  %v753_v43 = vrot.slane %v3724_v19, 2  ;;  %v3968_v53 = vrot.slane %v3731_v28, 2  ;;  %2981 = vrot.lane.b32.xlu1 %v2980_v54, %s3553_s21 }
  0x42   : > { %v761_v21 = vrot.slane %v6187_v25, 2  ;;  %v2990_v36 = vpack.i.bf16 %v752_v11, %v750_v24  ;;  %v6189_v61 = vunpack.c.l.bf16 %v3716_v14  ;;  %v768_v23 = vrot.slane %v3747_v40, 2 }
  0x43   : > { %v747_v27 = vsel %vm722_vm1, %v3948_v17, %v746_v33  ;;  %6188 = vst [vmem:[#allocation42_spill] sm:$0xff] %v3968_v53  ;;  %v760_v1 = vsel %vm722_vm1, %v758_v32, %v759_v34  ;;  %v769_v57 = vrot.slane %v3749_v44, 2  ;;  %v6190_v58 = vunpack.c.l.bf16 %v3734_v29  ;;  %2976 = vrot.lane.b32.xlu0 %v2975_v39, %s3553_s21 }
  0x44   : > { %v756_v18 = vrot.slane %v6189_v61, 2  ;;  %v762_v37 = vsel %vm722_vm1, %v759_v34, %v761_v21  ;;  %v2985_v25 = vpack.i.bf16 %v747_v27, %v3958_v0  ;;  %v763_v54 = vrot.slane %v3759_v52, 2 }
  0x45   : > { %v771_v33 = vrot.slane %v6190_v58, 2  ;;  %v3983_v14 = vrot.slane %v3772_v63, 2  ;;  %v3987_v24 = vsel %vm722_vm1, %v753_v43, %v3968_v53  ;;  %v6193_v32 = vunpack.c.l.bf16 %v3752_v45  ;;  %2991 = vrot.lane.b32.xlu1 %v2990_v36, %s3553_s21 }
  0x46   : > { %6192 = vst [vmem:[#allocation44_spill] sm:$0xff] %v3987_v24  ;;  %v757_v11 = vsel %vm722_vm1, %v3968_v53, %v756_v18  ;;  %v3000_v39 = vpack.i.bf16 %v762_v37, %v760_v1  ;;  %v770_v34 = vsel %vm722_vm1, %v768_v23, %v769_v57  ;;  %v778_v21 = vrot.slane %v3783_v31, 2  ;;  %v2573_v31 = vld [vmem:[%s3604_s19 + $0x6c] sm:$0xff]  }
  0x47   : > { %6191 = vst [vmem:[#allocation43_spill] sm:$0xff] %v3983_v14  ;;  %v766_v29 = vrot.slane %v6193_v32, 2  ;;  %v772_v27 = vsel %vm722_vm1, %v769_v57, %v771_v33  ;;  %v779_v61 = vrot.slane %v3791_v38, 2  ;;  %v6194_v43 = vunpack.c.l.bf16 %v3776_v15  ;;  %2986 = vrot.lane.b32.xlu0 %v2985_v25, %s3553_s21  ;;  %v2567_v38 = vld [vmem:[%s3604_s19 + $0x54] sm:$0xff]  }
  0x48   : > { %v2995_v18 = vpack.i.bf16 %v757_v11, %v3987_v24  ;;  %v4004_v45 = vsel %vm722_vm1, %v763_v54, %v3983_v14  ;;  %v773_v23 = vrot.slane %v3799_v60, 2  ;;  %v4010_v1 = vrot.slane %v3809_v49, 2  ;;  %v4165_v24 = vld [vmem:[%s3604_s19 + $0x14] sm:$0x1] }
  0x49   : > { %v781_v58 = vrot.slane %v6194_v43, 2  ;;  %6195 = vst [vmem:[#allocation45_spill] sm:$0xff] %v4004_v45  ;;  %v767_v36 = vsel %vm722_vm1, %v3983_v14, %v766_v29  ;;  %v6196_v37 = vunpack.c.l.bf16 %v3794_v46  ;;  %3001 = vrot.lane.b32.xlu1 %v3000_v39, %s3553_s21  ;;  %v3010_v57 = vpack.i.bf16 %v772_v27, %v770_v34 }
  0x4a   : > { %v788_v33 = vrot.slane %v3825_v56, 2  ;;  %v789_v25 = vrot.slane %v3827_v47, 2  ;;  %v780_v54 = vsel %vm722_vm1, %v778_v21, %v779_v61  ;;  %v6197_v32 = vunpack.c.l.bf16 %v3812_v22  ;;  %v2579_v47 = vld [vmem:[%s3604_s19 + $0x84] sm:$0xff]  }
  0x4b   : > { %v776_v15 = vrot.slane %v6196_v37, 2  ;;  %v782_v11 = vsel %vm722_vm1, %v779_v61, %v781_v58  ;;  %2996 = vrot.lane.b32.xlu0 %v2995_v18, %s3553_s21  ;;  %v3005_v43 = vpack.i.bf16 %v767_v36, %v4004_v45  ;;  %v783_v46 = vrot.slane %v3837_v5, 2 }
  0x4c   : > { %v791_v29 = vrot.slane %v6197_v32, 2  ;;  %v4025_v39 = vrot.slane %v3850_v30, 2  ;;  %v4029_v34 = vsel %vm722_vm1, %v773_v23, %v4010_v1  ;;  %v6198_v21 = vunpack.c.l.bf16 %v3830_v48 }
  0x4d   : > { %v777_v27 = vsel %vm722_vm1, %v4010_v1, %v776_v15  ;;  %3011 = vrot.lane.b32.xlu1 %v3010_v57, %s3553_s21  ;;  %v3020_v61 = vpack.i.bf16 %v782_v11, %v780_v54  ;;  %v790_v58 = vsel %vm722_vm1, %v788_v33, %v789_v25  ;;  %v798_v36 = vrot.slane %v3861_v16, 2 }
  0x4e   : > { %v786_v22 = vrot.slane %v6198_v21, 2  ;;  %v792_v18 = vsel %vm722_vm1, %v789_v25, %v791_v29  ;;  %v799_v37 = vrot.slane %v3869_v20, 2  ;;  %v6199_v23 = vunpack.c.l.bf16 %v3854_v35  ;;  %v2549_v21 = vld [vmem:[%s3604_s19 + $0xc] sm:$0xff]  }
  0x4f   : > { %3006 = vrot.lane.b32.xlu0 %v3005_v43, %s3553_s21  ;;  %v3015_v48 = vpack.i.bf16 %v777_v27, %v4029_v34  ;;  %v4046_v15 = vsel %vm722_vm1, %v783_v46, %v4025_v39  ;;  %v793_v33 = vrot.slane %v3877_v59, 2  ;;  %v4052_v25 = vrot.slane %v3886_v26, 2 }
  0x50   : > { %v801_v32 = vrot.slane %v6199_v23, 2  ;;  %6200 = vst [vmem:[#allocation46_spill] sm:$0xff] %v4046_v15  ;;  %v787_v57 = vsel %vm722_vm1, %v4025_v39, %v786_v22  ;;  %v6202_v35 = vunpack.c.l.bf16 %v3872_v55  ;;  %v3030_v11 = vpack.i.bf16 %v792_v18, %v790_v58  ;;  %v2555_v23 = vld [vmem:[%s3604_s19 + $0x24] sm:$0xff]  }
  0x51   : > { %6201 = vst [vmem:[#allocation47_spill] sm:$0xff] %v4052_v25  ;;  %3021 = vrot.lane.b32.xlu1 %v3020_v61, %s3553_s21  ;;  %v800_v29 = vsel %vm722_vm1, %v798_v36, %v799_v37  ;;  %v3025_v46 = vpack.i.bf16 %v787_v57, %v4046_v15  ;;  %v4063_v27 = vsel %vm722_vm1, %v793_v33, %v4052_v25  ;;  %v4070_v61 = vld [vmem:[%s3604_s19 + $0x38] sm:$0x1]  ;;  %v4074_v18 = vunpack.c.l.bf16 %v2549_v21 }
  0x52   : > { %v796_v54 = vrot.slane %v6202_v35, 2  ;;  %v802_v43 = vsel %vm722_vm1, %v799_v37, %v801_v32  ;;  %6203 = vst [vmem:[#allocation48_spill] sm:$0xff] %v4063_v27  ;;  %v4076_v36 = vunpack.c.h.bf16 %v2549_v21  ;;  %v4079_v37 = vld [vmem:[%s3604_s19 + $0x50] sm:$0x1]  ;;  %v6052_v32 = vunpack.c.l.bf16 %v4070_v61 }
  0x53   : > { %3016 = vrot.lane.b32.xlu0 %v3015_v48, %s3553_s21  ;;  %v3040_v22 = vpack.i.bf16 %v802_v43, %v800_v29  ;;  %6204 = vst [vmem:[#allocation49_spill] sm:$0xff] %v4079_v37  ;;  %v3050_v48 = vpack.i.bf16 %v3613_v4, %v3611_v3  ;;  %v6053_v33 = vunpack.c.l.bf16 %v4079_v37  ;;  %v2561_v29 = vld [vmem:[%s3604_s19 + $0x3c] sm:$0xff]   ;;  %v3060_v21 = vpack.i.bf16 %v3690_v51, %v3688_v50  ;;  %v4238_v50 = vld [vmem:[%s3604_s19 + $0x8c] sm:$0x1] }
  0x54   : > { %v797_v55 = vsel %vm722_vm1, %v4052_v25, %v796_v54  ;;  %v1061_v57 = vrot.slane %v6052_v32, 1  ;;  %v3045_v35 = vpack.i.bf16 %v4076_v36, %v4074_v18  ;;  %v4092_v54 = vunpack.c.l.bf16 %v2555_v23  ;;  %v6205_v43 = vld [vmem:[#allocation10_spill] sm:$0xff] }
  0x55   : > { %3031 = vrot.lane.b32.xlu1 %v3030_v11, %s3553_s21  ;;  %v3035_v58 = vpack.i.bf16 %v797_v55, %v4063_v27  ;;  %v4094_v11 = vunpack.c.h.bf16 %v2555_v23  ;;  %v1071_v55 = vrot.slane %v6053_v33, 1  ;;  %v6207_v23 = vld [vmem:[#allocation16_spill] sm:$0xff]  ;;  %v4117_v33 = vunpack.c.h.bf16 %v2561_v29  ;;  %v2557_v27 = vld [vmem:[%s3604_s19 + $0x2c] sm:$0x1] }
  0x56   : > { %v4134_v45 = vunpack.c.h.bf16 %v2567_v38  ;;  %v3080_v16 = vpack.i.bf16 %v3772_v63, %v3759_v52  ;;  %v4146_v56 = vunpack.c.l.bf16 %v2573_v31  ;;  %v3110_v52 = vpack.i.bf16 %v3886_v26, %v3877_v59 }
  0x57   : > { %3026 = vrot.lane.b32.xlu0 %v3025_v46, %s3553_s21  ;;  %v4099_v46 = vsel %vm545_vm0, %v6205_v43, %v1061_v57  ;;  %v4110_v32 = vsel %vm545_vm0, %v6207_v23, %v1071_v55  ;;  %v3055_v57 = vpack.i.bf16 %v4094_v11, %v4092_v54  ;;  %v4115_v43 = vunpack.c.l.bf16 %v2561_v29  ;;  %v2554_v55 = vld [vmem:[%s3604_s19 + $0x20] sm:$0x1] }
  0x58   : > { %v4127_v23 = vld [vmem:[%s3604_s19 + $0x80] sm:$0x1]  ;;  %v4132_v29 = vunpack.c.l.bf16 %v2567_v38  ;;  %v354_v14 = vunpack.c.l.bf16 %v2554_v55  ;;  %v4148_v55 = vunpack.c.h.bf16 %v2573_v31  ;;  %v3100_v31 = vpack.i.bf16 %v3850_v30, %v3837_v5 }
  0x59   : > { %3041 = vrot.lane.b32.xlu1 %v3040_v22, %s3553_s21  ;;  %v6206_v22 = vld [vmem:[#allocation13_spill] sm:$0xff]  ;;  %6208 = vst [vmem:[#allocation10_spill] sm:$0xff] %v4115_v43  ;;  %v1043_v53 = vrot.slane %v4074_v18, 1  ;;  %v357_v59 = vunpack.c.l.bf16 %v2557_v27  ;;  %v1044_v26 = vrot.slane %v4076_v36, 1  ;;  %v6217_v25 = vunpack.c.l.bf16 %v4165_v24 }
  0x5a   : > { %6209 = vst [vmem:[#allocation13_spill] sm:$0xff] %v4117_v33  ;;  %6211 = vst [vmem:[#allocation16_spill] sm:$0xff] %v4132_v29  ;;  %v1227_v20 = vrot.slane %v354_v14, 2  ;;  %v3075_v38 = vpack.i.bf16 %v4134_v45, %v4132_v29  ;;  %v6224_v41 = vunpack.c.l.bf16 %v4238_v50 }
  0x5b   : > { %3036 = vrot.lane.b32.xlu0 %v3035_v58, %s3553_s21  ;;  %v3070_v58 = vpack.i.bf16 %v3731_v28, %v3724_v19  ;;  %v6221_v28 = vld [vmem:[#allocation2_spill] sm:$0xff]  ;;  %v6222_v19 = vld [vmem:[#allocation3_spill] sm:$0xff] }
  0x5d   : > { %3051 = vrot.lane.b32.xlu1 %v3050_v48, %s3554_s22  ;;  %v6210_v48 = vld [vmem:[#allocation20_spill] sm:$0xff] }
  0x5e   : > { %6212 = vst [vmem:[#allocation20_spill] sm:$0xff] %v4134_v45 }
  0x5f   : > { %3046 = vrot.lane.b32.xlu0 %v3045_v35, %s3554_s22  ;;  %v3065_v35 = vpack.i.bf16 %v4117_v33, %v4115_v43 }
  0x61   : > { %3061 = vrot.lane.b32.xlu1 %v3060_v21, %s3554_s22  ;;  %v6062_v21 = vunpack.c.l.bf16 %v4127_v23 }
  0x63   : > { %3056 = vrot.lane.b32.xlu0 %v3055_v57, %s3554_s22  ;;  %v1267_v57 = vrot.slane %v6062_v21, 2  ;;  %v4162_v21 = vsel %vm722_vm1, %v3928_v7, %v1227_v20  ;;  %v2585_v20 = vld [vmem:[%s3604_s19 + $0x9c] sm:$0xff]  }
  0x64   : > { %v4180_v7 = vld [vmem:[%s3604_s19 + $0x80] sm:$0x1]  ;;  %v4194_v63 = vunpack.c.l.bf16 %v2585_v20  ;;  %v4196_v40 = vunpack.c.h.bf16 %v2585_v20  ;;  %v1046_v20 = vrot.slane %v6217_v25, 1  ;;  %v1053_v25 = vrot.slane %v4092_v54, 1 }
  0x65   : > { %3071 = vrot.lane.b32.xlu1 %v3070_v58, %s3554_s22  ;;  %v4154_v58 = vpack.i.bf16 %v3809_v49, %v3799_v60  ;;  %v3085_v60 = vpack.i.bf16 %v4148_v55, %v4146_v56  ;;  %v4174_v49 = vunpack.c.l.bf16 %v2579_v47  ;;  %v6082_v44 = vunpack.c.l.bf16 %v4180_v7 }
  0x66   : > { %6213 = vst [vmem:[#allocation50_spill] sm:$0xff] %v4194_v63  ;;  %6214 = vst [vmem:[#allocation51_spill] sm:$0xff] %v4196_v40  ;;  %v1103_v15 = vrot.slane %v4194_v63, 1 }
  0x67   : > { %3066 = vrot.lane.b32.xlu0 %v3065_v35, %s3554_s22  ;;  %v4158_v35 = vsel %vm722_vm1, %v4010_v1, %v1267_v57  ;;  %v4176_v57 = vunpack.c.h.bf16 %v2579_v47  ;;  %v1758_v62 = vrot.slane %v6082_v44, 2  ;;  %v1054_v44 = vrot.slane %v4094_v11, 1 }
  0x69   : > { %3081 = vrot.lane.b32.xlu1 %v3080_v16, %s3554_s22  ;;  %v2778_v16 = vld [vmem:[%s3604_s19 + $0xc0] sm:$0xff]   ;;  %v3095_v47 = vpack.i.bf16 %v4176_v57, %v4174_v49 }
  0x6a   : > { %v4199_v5 = vunpack.c.l.bf16 %v2778_v16  ;;  %v4201_v30 = vunpack.c.h.bf16 %v2778_v16  ;;  %v3105_v16 = vpack.i.bf16 %v4196_v40, %v4194_v63 }
  0x6b   : > { %3076 = vrot.lane.b32.xlu0 %v3075_v38, %s3554_s22  ;;  %v2591_v38 = vld [vmem:[%s3604_s19 + $0xb4] sm:$0xff]  }
  0x6c   : > { %6215 = vst [vmem:[#allocation52_spill] sm:$0xff] %v4199_v5  ;;  %6216 = vst [vmem:[#allocation53_spill] sm:$0xff] %v4201_v30  ;;  %v4214_v37 = vunpack.c.l.bf16 %v2591_v38  ;;  %v4216_v27 = vunpack.c.h.bf16 %v2591_v38  ;;  %v3120_v38 = vpack.i.bf16 %v4201_v30, %v4199_v5  ;;  %v1055_v5 = vsel %vm545_vm0, %v1053_v25, %v1054_v44 }
  0x6d   : > { %3091 = vrot.lane.b32.xlu1 %v4154_v58, %s3554_s22  ;;  %v1270_v25 = vrot.slane %v4176_v57, 2 }
  0x6e   : > { %6218 = vst [vmem:[#allocation54_spill] sm:$0xff] %v4214_v37  ;;  %6219 = vst [vmem:[#allocation55_spill] sm:$0xff] %v4216_v27 }
  0x6f   : > { %3086 = vrot.lane.b32.xlu0 %v3085_v60, %s3554_s22  ;;  %v1051_v60 = vrot.slane %v354_v14, 1  ;;  %v4223_v14 = vsel %vm722_vm1, %v4010_v1, %v1758_v62  ;;  %v1045_v62 = vsel %vm545_vm0, %v1043_v53, %v1044_v26  ;;  %v1047_v1 = vsel %vm545_vm0, %v1044_v26, %v1046_v20  ;;  %v4247_v53 = vld [vmem:[%s3604_s19 + $0x98] sm:$0x1]  ;;  %v4253_v20 = vld [vmem:[%s3604_s19 + $0x5c] sm:$0x1] }
  0x70   : > { %v3125_v30 = vpack.i.bf16 %v1047_v1, %v1045_v62  ;;  %v1063_v26 = vrot.slane %v4115_v43, 1  ;;  %6223 = vst [vmem:[#allocation2_spill] sm:$0xff] %v4253_v20  ;;  %v1084_v62 = vrot.slane %v4148_v55, 1  ;;  %v2575_v1 = vld [vmem:[%s3604_s19 + $0x74] sm:$0x1] }
  0x71   : > { %3101 = vrot.lane.b32.xlu1 %v3100_v31, %s3554_s22  ;;  %v4219_v31 = vld [vmem:[%s3604_s19 + $0x44] sm:$0x1]  ;;  %v1052_v2 = vsel %vm545_vm0, %v6221_v28, %v1051_v60  ;;  %v1064_v60 = vrot.slane %v4117_v33, 1  ;;  %v1272_v33 = vrot.slane %v6224_v41, 2 }
  0x72   : > { %6220 = vst [vmem:[#allocation56_spill] sm:$0xff] %v4219_v31  ;;  %v6095_v8 = vunpack.c.l.bf16 %v4219_v31  ;;  %v3130_v51 = vpack.i.bf16 %v1052_v2, %v6222_v19  ;;  %v1269_v2 = vrot.slane %v4174_v49, 2 }
  0x73   : > { %3096 = vrot.lane.b32.xlu0 %v3095_v47, %s3554_s22  ;;  %v1056_v47 = vrot.slane %v357_v59, 1  ;;  %v4278_v43 = vsel %vm722_vm1, %v1270_v25, %v1272_v33  ;;  %v1065_v41 = vsel %vm545_vm0, %v1063_v26, %v1064_v60 }
  0x74   : > { %v1066_v19 = vrot.slane %v6095_v8, 1  ;;  %v4271_v31 = vsel %vm722_vm1, %v1269_v2, %v1270_v25  ;;  %6227 = vst [vmem:[#allocation58_spill] sm:$0xff] %v4278_v43  ;;  %v375_v8 = vunpack.c.l.bf16 %v2575_v1  ;;  %v6230_v25 = vunpack.c.l.bf16 %v4253_v20 }
  0x75   : > { %3111 = vrot.lane.b32.xlu1 %v3110_v52, %s3554_s22  ;;  %v3115_v52 = vpack.i.bf16 %v4216_v27, %v4214_v37  ;;  %v1057_v28 = vsel %vm545_vm0, %v1054_v44, %v1056_v47  ;;  %v1229_v44 = vrot.slane %v4092_v54, 2  ;;  %v1230_v47 = vrot.slane %v4094_v11, 2  ;;  %6225 = vst [vmem:[#allocation3_spill] sm:$0xff] %v4271_v31 }
  0x76   : > { %v1232_v11 = vrot.slane %v357_v59, 2  ;;  %v6231_v1 = vpack.i.bf16 %v4099_v46, %v6206_v22  ;;  %v1259_v22 = vrot.slane %v4146_v56, 2 }
  0x77   : > { %3106 = vrot.lane.b32.xlu0 %v3105_v16, %s3554_s22  ;;  %v6100_v16 = vunpack.c.l.bf16 %v4247_v53  ;;  %v4274_v54 = vsel %vm722_vm1, %v1229_v44, %v1230_v47 }
  0x78   : > { %6226 = vst [vmem:[#allocation57_spill] sm:$0xff] %v4274_v54  ;;  %v4286_v44 = vsel %vm722_vm1, %v1230_v47, %v1232_v11  ;;  %v1076_v47 = vrot.slane %v6230_v25, 1  ;;  %v6232_v11 = vunpack.c.l.bf16 %v4127_v23  ;;  %v1260_v23 = vrot.slane %v4148_v55, 2 }
  0x79   : > { %3121 = vrot.lane.b32.xlu1 %v3120_v38, %s3554_s22  ;;  %v1083_v38 = vrot.slane %v4146_v56, 1  ;;  %v1277_v42 = vrot.slane %v6100_v16, 2  ;;  %6228 = vst [vmem:[#allocation59_spill] sm:$0xff] %v4286_v44  ;;  %v1220_v56 = vrot.slane %v4076_v36, 2  ;;  %v6236_v55 = vunpack.c.l.bf16 %v4165_v24  ;;  %v2600_v36 = vld [vmem:[%s3604_s19 + $0x24] sm:$0xff]  }
  0x7a   : > { %v1091_v59 = vrot.slane %v6232_v11, 1  ;;  %v1261_v11 = vsel %vm722_vm1, %v1259_v22, %v1260_v23 }
  0x7b   : > { %3116 = vrot.lane.b32.xlu0 %v3115_v52, %s3554_s22  ;;  %v3135_v52 = vpack.i.bf16 %v1057_v28, %v1055_v5  ;;  %v1074_v5 = vrot.slane %v4134_v45, 1  ;;  %v4295_v33 = vsel %vm722_vm1, %v4025_v39, %v1277_v42  ;;  %v1067_v28 = vsel %vm545_vm0, %v1064_v60, %v1066_v19 }
  0x7c   : > { %6229 = vst [vmem:[#allocation60_spill] sm:$0xff] %v4295_v33  ;;  %v1085_v26 = vsel %vm545_vm0, %v1083_v38, %v1084_v62  ;;  %v1093_v42 = vrot.slane %v4174_v49, 1  ;;  %v6099_v39 = vrot.slane %v4176_v57, 1  ;;  %v1086_v60 = vrot.slane %v375_v8, 1  ;;  %v6233_v38 = vld [vmem:[#allocation26_spill] sm:$0xff] }
  0x7d   : > { %3131 = vrot.lane.b32.xlu1 %v3130_v51, %s3555_s23  ;;  %v1073_v51 = vrot.slane %v4132_v29, 1  ;;  %v3145_v19 = vpack.i.bf16 %v1067_v28, %v1065_v41  ;;  %v3160_v25 = vpack.i.bf16 %v1085_v26, %v6233_v38  ;;  %v1077_v46 = vsel %vm545_vm0, %v1074_v5, %v1076_v47  ;;  %v2779_v28 = vld [vmem:[%s3604_s19 + $0x18] sm:$0xff]  }
  0x7e   : > { %v1262_v49 = vrot.slane %v375_v8, 2  ;;  %v1087_v8 = vsel %vm545_vm0, %v1084_v62, %v1086_v60  ;;  %v6237_v62 = vld [vmem:[#allocation32_spill] sm:$0xff]  ;;  %v4343_v38 = vunpack.c.h.bf16 %v2779_v28  ;;  %v6239_v45 = vunpack.c.l.bf16 %v4247_v53 }
  0x7f   : > { %3126 = vrot.lane.b32.xlu0 %v3125_v30, %s3555_s23  ;;  %v1075_v30 = vsel %vm545_vm0, %v1073_v51, %v1074_v5  ;;  %v1095_v51 = vsel %vm545_vm0, %v1093_v42, %v6099_v39  ;;  %v1219_v5 = vrot.slane %v4074_v18, 2  ;;  %v4337_v42 = vunpack.c.l.bf16 %v2779_v28 }
  0x80   : > { %v3155_v26 = vpack.i.bf16 %v1077_v46, %v1075_v30  ;;  %v1263_v18 = vsel %vm722_vm1, %v1260_v23, %v1262_v49  ;;  %v3165_v24 = vpack.i.bf16 %v6237_v62, %v1087_v8  ;;  %v2626_v30 = vld [vmem:[%s3604_s19 + $0x8c] sm:$0x1]  ;;  %v6238_v23 = vunpack.c.l.bf16 %v4180_v7 }
  0x81   : > { %3141 = vrot.lane.b32.xlu1 %v6231_v1, %s3555_s23  ;;  %v6234_v1 = vpack.i.bf16 %v4110_v32, %v6210_v48  ;;  %v1222_v32 = vrot.slane %v6236_v55, 2  ;;  %v2599_v48 = vld [vmem:[%s3604_s19 + $0x20] sm:$0x1]  ;;  %v1221_v60 = vsel %vm722_vm1, %v1219_v5, %v1220_v56  ;;  %v1539_v5 = vrot.slane %v4337_v42, 1 }
  0x82   : > { %v1582_v49 = vrot.slane %v6238_v23, 1  ;;  %v1540_v28 = vrot.slane %v4343_v38, 1  ;;  %v3180_v7 = vpack.i.bf16 %v1263_v18, %v1261_v11  ;;  %v1715_v2 = vrot.slane %v4337_v42, 2 }
  0x83   : > { %3136 = vrot.lane.b32.xlu0 %v3135_v52, %s3555_s23  ;;  %v6235_v52 = vld [vmem:[#allocation28_spill] sm:$0xff]  ;;  %v1223_v46 = vsel %vm722_vm1, %v1220_v56, %v1222_v32  ;;  %v478_v56 = vunpack.c.l.bf16 %v2626_v30  ;;  %v1716_v30 = vrot.slane %v4343_v38, 2  ;;  %v1101_v29 = vrot.slane %v6239_v45, 1 }
  0x84   : > { %v1092_v41 = vsel %vm545_vm0, %v6235_v52, %v1091_v59  ;;  %v2624_v59 = vld [vmem:[%s3604_s19 + $0x84] sm:$0xff]   ;;  %v4378_v11 = vsel %vm545_vm0, %v1539_v5, %v1540_v28  ;;  %v6240_v33 = vpack.i.bf16 %v4158_v35, %v4029_v34 }
  0x85   : > { %3151 = vrot.lane.b32.xlu1 %v6234_v1, %s3555_s23  ;;  %v3170_v47 = vpack.i.bf16 %v1095_v51, %v1092_v41  ;;  %v4347_v1 = vunpack.c.l.bf16 %v2624_v59  ;;  %v4349_v22 = vunpack.c.h.bf16 %v2624_v59  ;;  %v2602_v41 = vld [vmem:[%s3604_s19 + $0x2c] sm:$0x1]  ;;  %v4357_v51 = vunpack.c.h.bf16 %v2600_v36 }
  0x86   : > { %v3175_v59 = vpack.i.bf16 %v1223_v46, %v1221_v60  ;;  %v1587_v23 = vrot.slane %v478_v56, 1 }
  0x87   : > { %3146 = vrot.lane.b32.xlu0 %v3145_v19, %s3555_s23  ;;  %v451_v19 = vunpack.c.l.bf16 %v2599_v48  ;;  %v454_v48 = vunpack.c.l.bf16 %v2602_v41  ;;  %v1584_v18 = vrot.slane %v4347_v1, 1  ;;  %v1585_v46 = vrot.slane %v4349_v22, 1 }
  0x88   : > { %v1761_v16 = vrot.slane %v4349_v22, 2 }
  0x89   : > { %3161 = vrot.lane.b32.xlu1 %v3160_v25, %s3555_s23  ;;  %v4355_v25 = vunpack.c.l.bf16 %v2600_v36  ;;  %v1542_v32 = vrot.slane %v451_v19, 1  ;;  %v4370_v36 = vsel %vm545_vm0, %v6235_v52, %v1582_v49  ;;  %v1547_v5 = vrot.slane %v454_v48, 1 }
  0x8a   : > { %v1718_v39 = vrot.slane %v451_v19, 2  ;;  %v4426_v19 = vsel %vm722_vm1, %v1715_v2, %v1716_v30 }
  0x8b   : > { %3156 = vrot.lane.b32.xlu0 %v3155_v26, %s3555_s23  ;;  %v1544_v52 = vrot.slane %v4355_v25, 1  ;;  %v4390_v41 = vsel %vm545_vm0, %v1540_v28, %v1542_v32  ;;  %v1760_v26 = vrot.slane %v4347_v1, 2  ;;  %v1720_v49 = vrot.slane %v4355_v25, 2 }
  0x8c   : > { %v1721_v28 = vrot.slane %v4357_v51, 2  ;;  %v1723_v32 = vrot.slane %v454_v48, 2  ;;  %v4415_v48 = vsel %vm545_vm0, %v1585_v46, %v1587_v23  ;;  %v4429_v35 = vsel %vm722_vm1, %v1716_v30, %v1718_v39  ;;  %v6244_v30 = vld [vmem:[#allocation35_spill] sm:$0xff] }
  0x8d   : > { %v4361_v8 = vpop.permute.xlu1 %2896  ;;  %3171 = vrot.lane.b32.xlu1 %v3170_v47, %s3555_s23  ;;  %v4364_v55 = vpop.permute.xlu0 %2886  ;;  %v6243_v39 = vunpack.c.l.bf16 %v4238_v50  ;;  %v3215_v50 = vpack.i.bf16 %v4390_v41, %v4378_v11 }
  0x8e   : > { %v4442_v23 = vsel %vm722_vm1, %v1720_v49, %v1721_v28  ;;  %v4445_v2 = vsel %vm722_vm1, %v1721_v28, %v1723_v32  ;;  %v2780_v28 = vld [vmem:[%s3604_s19 + $0x30] sm:$0xff]   ;;  %v4474_v32 = vld [vmem:[%s3604_s19 + $0x38] sm:$0x1] }
  0x8f   : > { %3166 = vrot.lane.b32.xlu0 %v3165_v24, %s3555_s23  ;;  %v1545_v24 = vrot.slane %v4357_v51, 1  ;;  %v4507_v44 = vunpack.c.l.bf16 %v2780_v28 }
  0x91   : > { %v4381_v60 = vpop.permute.xlu1 %2901  ;;  %3181 = vrot.lane.b32.xlu1 %v3180_v7, %s3556_s24  ;;  %v1763_v7 = vrot.slane %v478_v56, 2  ;;  %v4412_v56 = vsel %vm545_vm0, %v1584_v18, %v1585_v46  ;;  %v4418_v53 = vsel %vm545_vm0, %v1544_v52, %v1545_v24  ;;  %v4421_v45 = vsel %vm545_vm0, %v1545_v24, %v1547_v5  ;;  %v2629_v24 = vld [vmem:[%s3604_s19 + $0x98] sm:$0x1] }
  0x92   : > { %v4393_v47 = vpop.permute.xlu0 %2891  ;;  %v6242_v18 = vpack.i.bf16 %v4162_v21, %v3938_v9  ;;  %v4451_v52 = vsel %vm545_vm0, %v6244_v30, %v1101_v29  ;;  %v6245_v9 = vrot.slane %v4196_v40, 1  ;;  %v6247_v5 = vunpack.c.l.bf16 %v4070_v61  ;;  %v6260_v40 = vld [vmem:[#allocation38_spill] sm:$0xff] }
  0x93   : > { %3176 = vrot.lane.b32.xlu0 %v3175_v59, %s3556_s24  ;;  %v4439_v46 = vsel %vm722_vm1, %v1761_v16, %v1763_v7  ;;  %v6248_v61 = vpack.i.bf16 %v4343_v38, %v4337_v42  ;;  %v481_v29 = vunpack.c.l.bf16 %v2629_v24  ;;  %v457_v42 = vunpack.c.l.bf16 %v4474_v32 }
  0x94   : > { %v4456_v21 = vsel %vm545_vm0, %v1103_v15, %v6245_v9  ;;  %v1237_v7 = vrot.slane %v6247_v5, 2  ;;  %v6250_v5 = vrot.slane %v4176_v57, 1  ;;  %v2606_v15 = vld [vmem:[%s3604_s19 + $0x3c] sm:$0xff]   ;;  %v6252_v38 = vpack.i.bf16 %v4349_v22, %v4347_v1 }
  0x95   : > { %v4401_v20 = vpop.permute.xlu1 %2911  ;;  %3191 = vrot.lane.b32.xlu1 %v6240_v33, %s3556_s24  ;;  %v4432_v33 = vsel %vm722_vm1, %v1760_v26, %v1761_v16  ;;  %v1096_v26 = vrot.slane %v6243_v39, 1  ;;  %v2784_v16 = vld [vmem:[%s3604_s19 + $0x90] sm:$0xff]   ;;  %v4486_v39 = vld [vmem:[%s3604_s19 + $0x44] sm:$0x1]  ;;  %v4528_v9 = vunpack.c.l.bf16 %v2606_v15  ;;  %v4530_v1 = vunpack.c.h.bf16 %v2606_v15 }
  0x96   : > { %v4423_v59 = vpop.permute.xlu0 %2906  ;;  %v4501_v41 = vunpack.c.l.bf16 %v2784_v16  ;;  %v4505_v54 = vunpack.c.h.bf16 %v2784_v16  ;;  %v6254_v22 = vpack.i.bf16 %v4357_v51, %v4355_v25  ;;  %v1549_v24 = vrot.slane %v4507_v44, 1 }
  0x97   : > { %6241 = vst [vmem:[#allocation26_spill] sm:$0xff] %v4423_v59  ;;  %3186 = vrot.lane.b32.xlu0 %v6242_v18, %s3556_s24  ;;  %v4483_v18 = vld [vmem:[%s3604_s19 + $0xa4] sm:$0x1]  ;;  %v4499_v11 = vsel %vm545_vm0, %v6250_v5, %v1096_v26  ;;  %v4518_v26 = vsel %vm722_vm1, %v3948_v17, %v1237_v7  ;;  %v1552_v16 = vrot.slane %v457_v42, 1  ;;  %v6256_v25 = vpack.i.bf16 %v4370_v36, %v6237_v62 }
  0x98   : > { %6251 = vst [vmem:[#allocation35_spill] sm:$0xff] %v4499_v11  ;;  %v1589_v7 = vrot.slane %v4501_v41, 1  ;;  %v6257_v51 = vunpack.c.l.bf16 %v4483_v18  ;;  %v6258_v31 = vunpack.c.l.bf16 %v4486_v39  ;;  %v1765_v59 = vrot.slane %v4501_v41, 2 }
  0x99   : > { %3201 = vrot.lane.b32.xlu1 %v4154_v58, %s3557_s25  ;;  %v4462_v49 = vpop.permute.xlu1 %2921  ;;  %v2630_v58 = vld [vmem:[%s3604_s19 + $0x9c] sm:$0xff]   ;;  %v1766_v62 = vrot.slane %v4505_v54, 2  ;;  %v1768_v36 = vrot.slane %v481_v29, 2  ;;  %v2904_v18 = vunpack.i.h.bf16 %v4381_v60 }
  0x9a   : > { %6246 = vst [vmem:[#allocation28_spill] sm:$0xff] %v4462_v49  ;;  %v4524_v5 = vunpack.c.l.bf16 %v2630_v58  ;;  %v4526_v32 = vunpack.c.h.bf16 %v2630_v58  ;;  %v1557_v43 = vrot.slane %v6258_v31, 1  ;;  %v6262_v31 = vpack.i.bf16 %v4415_v48, %v4412_v56 }
  0x9b   : > { %3196 = vrot.lane.b32.xlu0 %v6248_v61, %s3557_s25  ;;  %v4492_v30 = vpop.permute.xlu0 %2916  ;;  %v4520_v61 = vunpack.c.h.bf16 %v2780_v28  ;;  %v1590_v28 = vrot.slane %v4505_v54, 1  ;;  %v4605_v56 = vsel %vm722_vm1, %v1766_v62, %v1768_v36  ;;  %v1725_v48 = vrot.slane %v4507_v44, 2 }
  0x9c   : > { %6249 = vst [vmem:[#allocation32_spill] sm:$0xff] %v4492_v30  ;;  %v1594_v15 = vrot.slane %v4524_v5, 1  ;;  %v1555_v30 = vrot.slane %v4530_v1, 1  ;;  %v6265_v36 = vmov %v6257_v51 }
  0x9d   : > { %3211 = vrot.lane.b32.xlu1 %v6252_v38, %s3557_s25  ;;  %v4514_v57 = vpop.permute.xlu1 %2931  ;;  %v1592_v38 = vrot.slane %v481_v29, 1  ;;  %v1550_v58 = vrot.slane %v4520_v61, 1  ;;  %v4572_v11 = vsel %vm545_vm0, %v1589_v7, %v1590_v28 }
  0x9e   : > { %6253 = vst [vmem:[#allocation61_spill] sm:$0xff] %v4514_v57  ;;  %v1595_v57 = vrot.slane %v4526_v32, 1 }
  0x9f   : > { %3206 = vrot.lane.b32.xlu0 %v6254_v22, %s3557_s25  ;;  %v4536_v17 = vpop.permute.xlu0 %2926  ;;  %v1597_v22 = vrot.slane %v6257_v51, 1  ;;  %v4575_v29 = vsel %vm545_vm0, %v1590_v28, %v1592_v38  ;;  %v4602_v38 = vsel %vm722_vm1, %v1765_v59, %v1766_v62  ;;  %v1773_v62 = vrot.slane %v6265_v36, 2 }
  0xa0   : > { %6255 = vst [vmem:[#allocation62_spill] sm:$0xff] %v4536_v17  ;;  %v1554_v17 = vrot.slane %v4528_v9, 1  ;;  %v2889_v59 = vunpack.i.h.bf16 %v4364_v55  ;;  %v2888_v51 = vunpack.i.l.bf16 %v4364_v55  ;;  %v6268_v36 = vpack.i.bf16 %v4429_v35, %v4426_v19 }
  0xa1   : > { %3221 = vrot.lane.b32.xlu1 %v6256_v25, %s3558_s26  ;;  %v4581_v25 = vsel %vm545_vm0, %v1550_v58, %v1552_v16  ;;  %v4591_v7 = vsel %vm545_vm0, %v1595_v57, %v1597_v22  ;;  %v2893_v19 = vunpack.i.l.bf16 %v4393_v47 }
  0xa2   : > { %v4554_v49 = vpop.permute.xlu1 %2941  ;;  %v4594_v28 = vsel %vm545_vm0, %v1554_v17, %v1555_v30  ;;  %v2898_v17 = vunpack.i.l.bf16 %v4361_v8 }
  0xa3   : > { %6259 = vst [vmem:[#allocation63_spill] sm:$0xff] %v4554_v49  ;;  %3216 = vrot.lane.b32.xlu0 %v3215_v50, %s3558_s26  ;;  %v4578_v50 = vsel %vm545_vm0, %v1549_v24, %v1550_v58  ;;  %v4588_v49 = vsel %vm545_vm0, %v1594_v15, %v1595_v57  ;;  %v4597_v24 = vsel %vm545_vm0, %v1555_v30, %v1557_v43  ;;  %v1726_v58 = vrot.slane %v4520_v61, 2  ;;  %v4618_v15 = vld [vmem:[%s3604_s19 + $0xb0] sm:$0x1] }
  0xa4   : > { %v4569_v63 = vpop.permute.xlu0 %2936  ;;  %v2899_v57 = vunpack.i.h.bf16 %v4361_v8  ;;  %v6263_v43 = vpack.i.bf16 %v4421_v45, %v4418_v53  ;;  %v1728_v30 = vrot.slane %v457_v42, 2  ;;  %v1770_v8 = vrot.slane %v4524_v5, 2  ;;  %v2587_v45 = vld [vmem:[%s3604_s19 + $0xa4] sm:$0x1] }
  0xa5   : > { %6261 = vst [vmem:[#allocation38_spill] sm:$0xff] %v4569_v63  ;;  %3231 = vrot.lane.b32.xlu1 %v6262_v31, %s3558_s26  ;;  %v1771_v31 = vrot.slane %v4526_v32, 2  ;;  %v6264_v53 = vpack.i.bf16 %v4223_v14, %v4029_v34  ;;  %v4643_v63 = vsel %vm722_vm1, %v1725_v48, %v1726_v58  ;;  %v6121_v34 = vunpack.c.l.bf16 %v4618_v15 }
  0xa6   : > { %v4599_v16 = vpop.permute.xlu1 %2951  ;;  %v4648_v14 = vsel %vm1891_vm2, %v3613_v4, %v2899_v57  ;;  %v4662_v48 = vsel %vm722_vm1, %v1726_v58, %v1728_v30  ;;  %v2903_v4 = vunpack.i.l.bf16 %v4381_v60  ;;  %v6269_v58 = vpack.i.bf16 %v4439_v46, %v4432_v33 }
  0xa7   : > { %3226 = vrot.lane.b32.xlu0 %v6263_v43, %s3558_s26  ;;  %6266 = vst [vmem:[#allocation64_spill] sm:$0xff] %v4648_v14  ;;  %v4666_v57 = vsel %vm722_vm1, %v1770_v8, %v1771_v31  ;;  %v2894_v43 = vunpack.i.h.bf16 %v4393_v47  ;;  %v4679_v60 = vsel %vm722_vm1, %v1771_v31, %v1773_v62  ;;  %v6270_v30 = vunpack.c.l.bf16 %v4486_v39  ;;  %v6284_v47 = vld [vmem:[#allocation35_spill] sm:$0xff] }
  0xa8   : > { %v4620_v22 = vpop.permute.xlu0 %2946  ;;  %v1111_v42 = vrot.slane %v6121_v34, 1  ;;  %v4694_v33 = vsel %vm1891_vm2, %v3616_v6, %v2888_v51  ;;  %v4698_v46 = vsel %vm1891_vm2, %v3630_v13, %v2904_v18  ;;  %v6123_v62 = vrot.slane %v4216_v27, 1  ;;  %v6278_v18 = vld [vmem:[#allocation4_spill] sm:$0xff] }
  0xa9   : > { %3241 = vrot.lane.b32.xlu1 %v6264_v53, %s3559_s27  ;;  %v4652_v53 = vsel %vm1891_vm2, %v3611_v3, %v2898_v17  ;;  %v1730_v3 = vrot.slane %v4528_v9, 2  ;;  %v1731_v17 = vrot.slane %v4530_v1, 2  ;;  %v1733_v8 = vrot.slane %v6270_v30, 2  ;;  %6272 = vst [vmem:[#allocation67_spill] sm:$0xff] %v4694_v33  ;;  %6273 = vst [vmem:[#allocation68_spill] sm:$0xff] %v4698_v46 }
  0xaa   : > { %6267 = vst [vmem:[#allocation65_spill] sm:$0xff] %v4652_v53  ;;  %v4710_v31 = vsel %vm1891_vm2, %v3628_v12, %v2903_v4  ;;  %v2914_v6 = vunpack.i.h.bf16 %v4401_v20  ;;  %v6280_v12 = vpack.i.bf16 %v4456_v21, %v4451_v52  ;;  %v6285_v34 = vpack.i.bf16 %v6260_v40, %v6284_v47  ;;  %v6292_v47 = vld [vmem:[#allocation58_spill] sm:$0xff]  ;;  %v6299_v40 = vld [vmem:[#allocation8_spill] sm:$0xff] }
  0xab   : > { %3236 = vrot.lane.b32.xlu0 %v6268_v36, %s3559_s27  ;;  %v4659_v55 = vpop.permute.xlu1 %2961  ;;  %v4685_v36 = vsel %vm1891_vm2, %v3625_v10, %v2889_v59  ;;  %v6274_v10 = vpack.i.bf16 %v4445_v2, %v4442_v23  ;;  %v1113_v59 = vrot.slane %v4214_v37, 1  ;;  %6275 = vst [vmem:[#allocation69_spill] sm:$0xff] %v4710_v31  ;;  %v4716_v51 = vsel %vm722_vm1, %v1730_v3, %v1731_v17  ;;  %v6276_v23 = vld [vmem:[#allocation5_spill] sm:$0xff]  ;;  %v6295_v53 = vld [vmem:[#allocation10_spill] sm:$0xff] }
  0xac   : > { %6271 = vst [vmem:[#allocation66_spill] sm:$0xff] %v4685_v36  ;;  %v4720_v2 = vsel %vm1891_vm2, %v6276_v23, %v2894_v43  ;;  %v4733_v4 = vsel %vm722_vm1, %v1731_v17, %v1733_v8  ;;  %v387_v3 = vunpack.c.l.bf16 %v2587_v45  ;;  %v6281_v43 = vld [vmem:[#allocation26_spill] sm:$0xff]  ;;  %v6288_v17 = vld [vmem:[#allocation51_spill] sm:$0xff]  ;;  %v1239_v14 = vrot.slane %v6295_v53, 2  ;;  %v6296_v31 = vld [vmem:[#allocation13_spill] sm:$0xff] }
  0xad   : > { %v4672_v35 = vpop.permute.xlu0 %2956  ;;  %3251 = vrot.lane.b32.xlu1 %v6269_v58, %s3559_s27  ;;  %6277 = vst [vmem:[#allocation5_spill] sm:$0xff] %v4720_v2  ;;  %v4724_v58 = vsel %vm1891_vm2, %v6278_v18, %v2893_v19  ;;  %v2909_v23 = vunpack.i.h.bf16 %v6281_v43  ;;  %v2908_v13 = vunpack.i.l.bf16 %v6281_v43  ;;  %v6282_v19 = vld [vmem:[#allocation40_spill] sm:$0xff]  ;;  %v4751_v21 = vsel %vm545_vm0, %v1113_v59, %v6123_v62  ;;  %v6293_v59 = vld [vmem:[#allocation3_spill] sm:$0xff] }
  0xae   : > { %6279 = vst [vmem:[#allocation4_spill] sm:$0xff] %v4724_v58  ;;  %v4740_v18 = vsel %vm545_vm0, %v6282_v19, %v1111_v42  ;;  %6286 = vst [vmem:[#allocation40_spill] sm:$0xff] %v4751_v21  ;;  %v1280_v8 = vrot.slane %v6288_v17, 2  ;;  %v6290_v43 = vld [vmem:[#allocation28_spill] sm:$0xff]  ;;  %v6294_v62 = vpack.i.bf16 %v6292_v47, %v6293_v59  ;;  %v1282_v27 = vrot.slane %v387_v3, 2  ;;  %v6301_v53 = vld [vmem:[#allocation59_spill] sm:$0xff] }
  0xaf   : > { %3246 = vrot.lane.b32.xlu0 %v6274_v10, %s3559_s27  ;;  %v4704_v39 = vpop.permute.xlu1 %2971  ;;  %v2913_v10 = vunpack.i.l.bf16 %v4401_v20  ;;  %6283 = vst [vmem:[#allocation26_spill] sm:$0xff] %v4740_v18  ;;  %v6287_v20 = vld [vmem:[#allocation50_spill] sm:$0xff]  ;;  %v2924_v19 = vunpack.i.h.bf16 %v6290_v43  ;;  %v2923_v37 = vunpack.i.l.bf16 %v6290_v43  ;;  %v6298_v43 = vld [vmem:[#allocation9_spill] sm:$0xff]  ;;  %v1900_v33 = vsel %vm1891_vm2, %v6299_v40, %v2908_v13  ;;  %v6300_v47 = vld [vmem:[#allocation32_spill] sm:$0xff] }
  0xb0   : > { %v1279_v45 = vrot.slane %v6287_v20, 2  ;;  %v1106_v20 = vrot.slane %v387_v3, 1  ;;  %v1901_v36 = vsel %vm1891_vm2, %v6298_v43, %v2909_v23  ;;  %v2918_v3 = vunpack.i.l.bf16 %v6300_v47  ;;  %v6302_v59 = vld [vmem:[#allocation57_spill] sm:$0xff]  ;;  %v6304_v23 = vld [vmem:[#allocation12_spill] sm:$0xff]  ;;  %v6305_v13 = vld [vmem:[#allocation11_spill] sm:$0xff] }
  0xb1   : > { %v4726_v30 = vpop.permute.xlu0 %2966  ;;  %3261 = vrot.lane.b32.xlu1 %v6280_v12, %s3555_s23  ;;  %v6289_v12 = vld [vmem:[#allocation7_spill] sm:$0xff]  ;;  %v1906_v40 = vsel %vm1891_vm2, %v6305_v13, %v2923_v37  ;;  %v6307_v21 = vld [vmem:[#allocation46_spill] sm:$0xff]  ;;  %v6310_v37 = vld [vmem:[#allocation56_spill] sm:$0xff] }
  0xb2   : > { %v1903_v42 = vsel %vm1891_vm2, %v6289_v12, %v2914_v6  ;;  %v1240_v6 = vrot.slane %v6296_v31, 2  ;;  %v6297_v12 = vld [vmem:[#allocation6_spill] sm:$0xff]  ;;  %v6303_v31 = vpack.i.bf16 %v6301_v53, %v6302_v59  ;;  %v6309_v53 = vrot.slane %v6288_v17, 1  ;;  %v6312_v13 = vld [vmem:[#allocation15_spill] sm:$0xff] }
  0xb3   : > { %3256 = vrot.lane.b32.xlu0 %v6285_v34, %s3555_s23  ;;  %v4746_v52 = vpop.permute.xlu1 %2981  ;;  %v1902_v46 = vsel %vm1891_vm2, %v6297_v12, %v2913_v10  ;;  %v4784_v10 = vsel %vm722_vm1, %v1279_v45, %v1280_v8  ;;  %v1907_v12 = vsel %vm1891_vm2, %v6304_v23, %v2924_v19  ;;  %v4800_v45 = vsel %vm722_vm1, %v1280_v8, %v1282_v27 }
  0xb4   : > { %v4797_v59 = vsel %vm545_vm0, %v6309_v53, %v1106_v20  ;;  %v4803_v19 = vsel %vm722_vm1, %v1239_v14, %v1240_v6  ;;  %v6314_v14 = vpack.i.bf16 %v4518_v26, %v3958_v0  ;;  %v6316_v0 = vunpack.c.l.bf16 %v4618_v15  ;;  %v6321_v15 = vld [vmem:[#allocation41_spill] sm:$0xff] }
  0xb5   : > { %v4761_v34 = vpop.permute.xlu0 %2976  ;;  %3271 = vrot.lane.b32.xlu1 %v6294_v62, %s3556_s24  ;;  %v2919_v62 = vunpack.i.h.bf16 %v6300_v47  ;;  %v6306_v47 = vld [vmem:[#allocation60_spill] sm:$0xff] }
  0xb6   : > { %6291 = vst [vmem:[#allocation35_spill] sm:$0xff] %v4761_v34  ;;  %v6308_v34 = vpack.i.bf16 %v6306_v47, %v6307_v21  ;;  %v6313_v47 = vld [vmem:[#allocation14_spill] sm:$0xff]  ;;  %v1287_v26 = vrot.slane %v6316_v0, 2 }
  0xb7   : > { %3266 = vrot.lane.b32.xlu0 %v6303_v31, %s3556_s24  ;;  %v2992_v58 = vpop.permute.xlu1 %2991  ;;  %v6311_v31 = vunpack.c.l.bf16 %v6310_v37  ;;  %v1905_v20 = vsel %vm1891_vm2, %v6312_v13, %v2919_v62  ;;  %v1904_v27 = vsel %vm1891_vm2, %v6313_v47, %v2918_v3  ;;  %v6315_v3 = vpack.i.bf16 %v4505_v54, %v4501_v41 }
  0xb8   : > { %v2994_v43 = vunpack.i.h.bf16 %v2992_v58  ;;  %v2993_v2 = vunpack.i.l.bf16 %v2992_v58  ;;  %v6320_v54 = vpack.i.bf16 %v4520_v61, %v4507_v44 }
  0xb9   : > { %v2987_v18 = vpop.permute.xlu0 %2986  ;;  %3281 = vrot.lane.b32.xlu1 %v6308_v34, %s3556_s24  ;;  %v1242_v58 = vrot.slane %v6311_v31, 2 }
  0xba   : > { %v4808_v23 = vsel %vm1924_vm3, %v1903_v42, %v2994_v43  ;;  %v4811_v21 = vsel %vm1924_vm3, %v1902_v46, %v2993_v2  ;;  %v2989_v34 = vunpack.i.h.bf16 %v2987_v18  ;;  %v2988_v17 = vunpack.i.l.bf16 %v2987_v18  ;;  %v6317_v43 = vld [vmem:[#allocation49_spill] sm:$0xff] }
  0xbb   : > { %3276 = vrot.lane.b32.xlu0 %v6314_v14, %s3556_s24  ;;  %v3002_v8 = vpop.permute.xlu1 %3001  ;;  %v6318_v53 = vunpack.c.l.bf16 %v6317_v43  ;;  %v4852_v14 = vsel %vm722_vm1, %v1240_v6, %v1242_v58  ;;  %v6324_v6 = vpack.i.bf16 %v4526_v32, %v4524_v5  ;;  %v6325_v58 = vld [vmem:[#allocation47_spill] sm:$0xff]  ;;  %v6326_v43 = vld [vmem:[#allocation42_spill] sm:$0xff]  ;;  %v2954_v32 = vunpack.i.h.bf16 %v4599_v16 }
  0xbc   : > { %v4822_v42 = vsel %vm1924_vm3, %v1900_v33, %v2988_v17  ;;  %v4825_v46 = vsel %vm1924_vm3, %v1901_v36, %v2989_v34  ;;  %v3004_v2 = vunpack.i.h.bf16 %v3002_v8  ;;  %v3003_v18 = vunpack.i.l.bf16 %v3002_v8  ;;  %v6319_v17 = vld [vmem:[#allocation61_spill] sm:$0xff]  ;;  %v2781_v8 = vld [vmem:[%s3604_s19 + $0x48] sm:$0xff]  }
  0xbd   : > { %v2997_v62 = vpop.permute.xlu0 %2996  ;;  %3291 = vrot.lane.b32.xlu1 %v6315_v3, %s3557_s25  ;;  %v1247_v33 = vrot.slane %v6318_v53, 2  ;;  %v2934_v13 = vunpack.i.h.bf16 %v6319_v17  ;;  %v2933_v47 = vunpack.i.l.bf16 %v6319_v17  ;;  %v4872_v0 = vsel %vm722_vm1, %v6325_v58, %v1287_v26  ;;  %v6327_v17 = vld [vmem:[#allocation18_spill] sm:$0xff] }
  0xbe   : > { %v4836_v37 = vsel %vm1924_vm3, %v1907_v12, %v3004_v2  ;;  %v4839_v36 = vsel %vm1924_vm3, %v1906_v40, %v3003_v18  ;;  %v2999_v31 = vunpack.i.h.bf16 %v2997_v62  ;;  %v2998_v34 = vunpack.i.l.bf16 %v2997_v62  ;;  %v2785_v40 = vld [vmem:[%s3604_s19 + $0xa8] sm:$0xff]   ;;  %v6322_v2 = vld [vmem:[#allocation62_spill] sm:$0xff]  ;;  %v4929_v12 = vld [vmem:[%s3604_s19 + $0xb0] sm:$0x1] }
  0xbf   : > { %3286 = vrot.lane.b32.xlu0 %v6320_v54, %s3557_s25  ;;  %v4847_v41 = vpop.permute.xlu1 %3011  ;;  %v2929_v18 = vunpack.i.h.bf16 %v6322_v2  ;;  %v2928_v62 = vunpack.i.l.bf16 %v6322_v2  ;;  %v4876_v53 = vsel %vm722_vm1, %v6326_v43, %v1247_v33  ;;  %v4888_v5 = vsel %vm1891_vm2, %v6327_v17, %v2934_v13  ;;  %v6330_v2 = vld [vmem:[#allocation17_spill] sm:$0xff]  ;;  %v6334_v43 = vld [vmem:[#allocation19_spill] sm:$0xff] }
  0xc0   : > { %v4859_v3 = vsel %vm1924_vm3, %v1904_v27, %v2998_v34  ;;  %v4862_v44 = vsel %vm1924_vm3, %v1905_v20, %v2999_v31  ;;  %v4878_v27 = vunpack.c.l.bf16 %v2785_v40  ;;  %v4880_v20 = vunpack.c.h.bf16 %v2785_v40 }
  0xc1   : > { %v4864_v61 = vpop.permute.xlu0 %3006  ;;  %3301 = vrot.lane.b32.xlu1 %v6324_v6, %s3557_s25  ;;  %v4882_v31 = vunpack.c.l.bf16 %v2781_v8  ;;  %v4884_v34 = vunpack.c.h.bf16 %v2781_v8  ;;  %v2953_v26 = vunpack.i.l.bf16 %v4599_v16  ;;  %v6328_v33 = vpack.i.bf16 %v4530_v1, %v4528_v9  ;;  %v2636_v8 = vld [vmem:[%s3604_s19 + $0xb4] sm:$0xff]  }
  0xc2   : > { %6323 = vst [vmem:[#allocation50_spill] sm:$0xff] %v4864_v61  ;;  %v4903_v13 = vsel %vm1891_vm2, %v6330_v2, %v2933_v47  ;;  %v6332_v6 = vld [vmem:[#allocation21_spill] sm:$0xff]  ;;  %v2949_v16 = vunpack.i.h.bf16 %v4620_v22  ;;  %v4915_v17 = vsel %vm1891_vm2, %v6334_v43, %v2928_v62  ;;  %v6337_v47 = vpack.i.bf16 %v4575_v29, %v4572_v11  ;;  %v6340_v11 = vld [vmem:[#allocation30_spill] sm:$0xff] }
  0xc3   : > { %3296 = vrot.lane.b32.xlu0 %v6328_v33, %s3557_s25  ;;  %v4896_v54 = vpop.permute.xlu1 %3021  ;;  %6331 = vst [vmem:[#allocation7_spill] sm:$0xff] %v4903_v13  ;;  %v4907_v58 = vsel %vm1891_vm2, %v6332_v6, %v2929_v18  ;;  %v2612_v1 = vld [vmem:[%s3604_s19 + $0x54] sm:$0xff]   ;;  %6335 = vst [vmem:[#allocation58_spill] sm:$0xff] %v4915_v17  ;;  %v2948_v33 = vunpack.i.l.bf16 %v4620_v22  ;;  %v4935_v43 = vunpack.c.l.bf16 %v2636_v8  ;;  %v1919_v29 = vsel %vm1891_vm2, %v6340_v11, %v2954_v32  ;;  %v4955_v11 = vld [vmem:[%s3604_s19 + $0x50] sm:$0x1] }
  0xc4   : > { %6329 = vst [vmem:[#allocation51_spill] sm:$0xff] %v4896_v54  ;;  %6333 = vst [vmem:[#allocation28_spill] sm:$0xff] %v4907_v58  ;;  %v6338_v18 = vld [vmem:[#allocation48_spill] sm:$0xff]  ;;  %v6342_v9 = vpack.i.bf16 %v4581_v25, %v4578_v50  ;;  %v4947_v62 = vunpack.c.l.bf16 %v2612_v1  ;;  %v4949_v58 = vunpack.c.h.bf16 %v2612_v1  ;;  %v6343_v22 = vld [vmem:[#allocation33_spill] sm:$0xff]  ;;  %v2964_v25 = vunpack.i.h.bf16 %v4659_v55 }
  0xc5   : > { %v4918_v40 = vpop.permute.xlu0 %3016  ;;  %3311 = vrot.lane.b32.xlu1 %v6337_v47, %s3558_s26  ;;  %v6339_v6 = vld [vmem:[#allocation44_spill] sm:$0xff]  ;;  %v6341_v47 = vld [vmem:[#allocation29_spill] sm:$0xff]  ;;  %v2963_v50 = vunpack.i.l.bf16 %v4659_v55  ;;  %v6345_v1 = vpack.i.bf16 %v4591_v7, %v4588_v49  ;;  %v2959_v55 = vunpack.i.h.bf16 %v4672_v35  ;;  %v2958_v61 = vunpack.i.l.bf16 %v4672_v35 }
  0xc6   : > { %6336 = vst [vmem:[#allocation3_spill] sm:$0xff] %v4918_v40  ;;  %v4937_v40 = vunpack.c.h.bf16 %v2636_v8  ;;  %v1918_v2 = vsel %vm1891_vm2, %v6341_v47, %v2953_v26  ;;  %v1917_v8 = vsel %vm1891_vm2, %v6343_v22, %v2949_v16  ;;  %v6344_v26 = vld [vmem:[#allocation31_spill] sm:$0xff]  ;;  %v1599_v16 = vrot.slane %v4878_v27, 1  ;;  %v6349_v35 = vld [vmem:[#allocation36_spill] sm:$0xff] }
  0xc7   : > { %3306 = vrot.lane.b32.xlu0 %v6342_v9, %s3558_s26  ;;  %v3032_v54 = vpop.permute.xlu1 %3031  ;;  %v1916_v47 = vsel %vm1891_vm2, %v6344_v26, %v2948_v33  ;;  %v4973_v26 = vld [vmem:[%s3604_s19 + $0xbc] sm:$0x1]  ;;  %v6348_v49 = vpack.i.bf16 %v4597_v24, %v4594_v28 }
  0xc8   : > { %v3034_v17 = vunpack.i.h.bf16 %v3032_v54  ;;  %v3033_v13 = vunpack.i.l.bf16 %v3032_v54 }
  0xc9   : > { %v3027_v9 = vpop.permute.xlu0 %3026  ;;  %3321 = vrot.lane.b32.xlu1 %v6345_v1, %s3558_s26 }
  0xca   : > { %v4967_v54 = vsel %vm1924_vm3, %v1919_v29, %v3034_v17  ;;  %v4970_v22 = vsel %vm1924_vm3, %v1918_v2, %v3033_v13  ;;  %v3029_v32 = vunpack.i.h.bf16 %v3027_v9  ;;  %v3028_v33 = vunpack.i.l.bf16 %v3027_v9 }
  0xcb   : > { %6346 = vst [vmem:[#allocation10_spill] sm:$0xff] %v4967_v54  ;;  %6347 = vst [vmem:[#allocation13_spill] sm:$0xff] %v4970_v22  ;;  %3316 = vrot.lane.b32.xlu0 %v6348_v49, %s3558_s26  ;;  %v3042_v7 = vpop.permute.xlu1 %3041  ;;  %v1600_v17 = vrot.slane %v4880_v20, 1  ;;  %v1923_v54 = vsel %vm1891_vm2, %v6349_v35, %v2964_v25  ;;  %v6350_v22 = vld [vmem:[#allocation34_spill] sm:$0xff]  ;;  %v6351_v49 = vpack.i.bf16 %v4605_v56, %v4602_v38  ;;  %v6355_v38 = vld [vmem:[#allocation37_spill] sm:$0xff] }
  0xcc   : > { %v4984_v2 = vsel %vm1924_vm3, %v1916_v47, %v3028_v33  ;;  %v4987_v29 = vsel %vm1924_vm3, %v1917_v8, %v3029_v32  ;;  %v3044_v9 = vunpack.i.h.bf16 %v3042_v7  ;;  %v3043_v1 = vunpack.i.l.bf16 %v3042_v7 }
  0xcd   : > { %v1922_v28 = vsel %vm1891_vm2, %v6350_v22, %v2963_v50  ;;  %v3037_v24 = vpop.permute.xlu0 %3036  ;;  %3331 = vrot.lane.b32.xlu1 %v6351_v49, %s3559_s27  ;;  %v6352_v47 = vunpack.c.l.bf16 %v4929_v12  ;;  %v6132_v8 = vunpack.c.l.bf16 %v4973_v26  ;;  %v5007_v50 = vld [vmem:[%s3604_s19 + $0x5c] sm:$0x1]  ;;  %v6354_v22 = vld [vmem:[#allocation39_spill] sm:$0xff]  ;;  %v1920_v56 = vsel %vm1891_vm2, %v6355_v38, %v2958_v61 }
  0xce   : > { %v5001_v32 = vsel %vm1924_vm3, %v1923_v54, %v3044_v9  ;;  %v5004_v7 = vsel %vm1924_vm3, %v1922_v28, %v3043_v1  ;;  %v3039_v25 = vunpack.i.h.bf16 %v3037_v24  ;;  %v3038_v35 = vunpack.i.l.bf16 %v3037_v24 }
  0xcf   : > { %v1602_v33 = vrot.slane %v6352_v47, 1  ;;  %6353 = vst [vmem:[#allocation6_spill] sm:$0xff] %v5001_v32  ;;  %v1921_v13 = vsel %vm1891_vm2, %v6354_v22, %v2959_v55  ;;  %v6356_v49 = vpack.i.bf16 %v4662_v48, %v4643_v63  ;;  %v5017_v54 = vpop.permute.xlu1 %3051  ;;  %v1559_v9 = vrot.slane %v4882_v31, 1  ;;  %v6373_v32 = vld [vmem:[#allocation66_spill] sm:$0xff] }
  0xd0   : > { %v1560_v1 = vrot.slane %v4884_v34, 1  ;;  %v5022_v28 = vsel %vm1924_vm3, %v1920_v56, %v3038_v35  ;;  %v5025_v24 = vsel %vm1924_vm3, %v1921_v13, %v3039_v25  ;;  %v6359_v55 = vunpack.c.l.bf16 %v4955_v11  ;;  %v6366_v25 = vld [vmem:[#allocation40_spill] sm:$0xff] }
  0xd1   : > { %3326 = vrot.lane.b32.xlu0 %v6356_v49, %s3559_s27  ;;  %6357 = vst [vmem:[#allocation9_spill] sm:$0xff] %v5022_v28  ;;  %6358 = vst [vmem:[#allocation8_spill] sm:$0xff] %v5025_v24  ;;  %v2974_v63 = vunpack.i.h.bf16 %v4704_v39  ;;  %v5032_v48 = vpop.permute.xlu0 %3046  ;;  %v6361_v22 = vpack.i.bf16 %v4679_v60, %v4666_v57  ;;  %v5039_v35 = vsel %vm545_vm0, %v1599_v16, %v1600_v17  ;;  %v2973_v38 = vunpack.i.l.bf16 %v4704_v39  ;;  %v6367_v39 = vld [vmem:[#allocation26_spill] sm:$0xff] }
  0xd2   : > { %v1562_v47 = vrot.slane %v6359_v55, 1  ;;  %6360 = vst [vmem:[#allocation32_spill] sm:$0xff] %v5032_v48  ;;  %v5042_v13 = vsel %vm545_vm0, %v1600_v17, %v1602_v33  ;;  %v1604_v56 = vrot.slane %v4935_v43, 1  ;;  %v1605_v49 = vrot.slane %v4937_v40, 1 }
  0xd3   : > { %3341 = vrot.lane.b32.xlu1 %v6361_v22, %s3559_s27  ;;  %v1607_v55 = vrot.slane %v6132_v8, 1  ;;  %v2969_v57 = vunpack.i.h.bf16 %v4726_v30  ;;  %v2968_v60 = vunpack.i.l.bf16 %v4726_v30  ;;  %v6362_v16 = vpack.i.bf16 %v4733_v4, %v4716_v51  ;;  %v5056_v17 = vpop.permute.xlu1 %3061  ;;  %v6364_v51 = vld [vmem:[#allocation35_spill] sm:$0xff]  ;;  %v6370_v30 = vld [vmem:[#allocation4_spill] sm:$0xff] }
  0xd4   : > { %6363 = vst [vmem:[#allocation59_spill] sm:$0xff] %v5056_v17  ;;  %v5061_v33 = vsel %vm545_vm0, %v1559_v9, %v1560_v1  ;;  %v2984_v22 = vunpack.i.h.bf16 %v4746_v52  ;;  %v2983_v61 = vunpack.i.l.bf16 %v4746_v52  ;;  %v5068_v8 = vsel %vm545_vm0, %v1560_v1, %v1562_v47  ;;  %v6371_v47 = vld [vmem:[#allocation5_spill] sm:$0xff] }
  0xd5   : > { %3336 = vrot.lane.b32.xlu0 %v6362_v16, %s3559_s27  ;;  %v2979_v4 = vunpack.i.h.bf16 %v6364_v51  ;;  %v5071_v16 = vpop.permute.xlu0 %3056  ;;  %v6368_v48 = vpack.i.bf16 %v6366_v25, %v6367_v39  ;;  %v1564_v9 = vrot.slane %v4947_v62, 1  ;;  %v1565_v17 = vrot.slane %v4949_v58, 1  ;;  %v6372_v25 = vld [vmem:[#allocation67_spill] sm:$0xff] }
  0xd6   : > { %6365 = vst [vmem:[#allocation57_spill] sm:$0xff] %v5071_v16  ;;  %v6369_v52 = vunpack.c.l.bf16 %v5007_v50  ;;  %v5083_v1 = vsel %vm1924_vm3, %v6370_v30, %v2973_v38  ;;  %v5087_v28 = vsel %vm1924_vm3, %v6371_v47, %v2974_v63  ;;  %v5090_v16 = vsel %vm545_vm0, %v1604_v56, %v1605_v49 }
  0xd7   : > { %3351 = vrot.lane.b32.xlu1 %v6368_v48, %s3555_s23  ;;  %v5093_v48 = vsel %vm545_vm0, %v1605_v49, %v1607_v55  ;;  %v5097_v39 = vsel %vm1924_vm3, %v6372_v25, %v2968_v60  ;;  %v2978_v38 = vunpack.i.l.bf16 %v6364_v51  ;;  %v6375_v63 = vpack.i.bf16 %v6321_v15, %v4797_v59  ;;  %v3072_v56 = vpop.permute.xlu1 %3071  ;;  %v6376_v55 = vld [vmem:[#allocation68_spill] sm:$0xff]  ;;  %v6377_v60 = vld [vmem:[#allocation69_spill] sm:$0xff] }
  0xd8   : > { %v1567_v24 = vrot.slane %v6369_v52, 1  ;;  %v5101_v52 = vsel %vm1924_vm3, %v6373_v32, %v2969_v57  ;;  %v5112_v30 = vsel %vm1924_vm3, %v6376_v55, %v2984_v22  ;;  %v5116_v47 = vsel %vm1924_vm3, %v6377_v60, %v2983_v61  ;;  %v6378_v51 = vld [vmem:[#allocation64_spill] sm:$0xff] }
  0xd9   : > { %6374 = vst [vmem:[#allocation12_spill] sm:$0xff] %v5101_v52  ;;  %3346 = vrot.lane.b32.xlu0 %v6375_v63, %s3555_s23  ;;  %v3074_v32 = vunpack.i.h.bf16 %v3072_v56  ;;  %v3073_v57 = vunpack.i.l.bf16 %v3072_v56  ;;  %v5120_v25 = vsel %vm1924_vm3, %v6378_v51, %v2979_v4  ;;  %v3067_v59 = vpop.permute.xlu0 %3066  ;;  %v6379_v15 = vpack.i.bf16 %v4800_v45, %v4784_v10  ;;  %v6380_v45 = vld [vmem:[#allocation65_spill] sm:$0xff] }
  0xda   : > { %v5129_v63 = vsel %vm545_vm0, %v1564_v9, %v1565_v17  ;;  %v5132_v61 = vsel %vm545_vm0, %v1565_v17, %v1567_v24  ;;  %v3069_v55 = vunpack.i.h.bf16 %v3067_v59  ;;  %v3068_v10 = vunpack.i.l.bf16 %v3067_v59 }
  0xdb   : > { %3361 = vrot.lane.b32.xlu1 %v6379_v15, %s3556_s24  ;;  %v5136_v56 = vsel %vm1957_vm4, %v4811_v21, %v3073_v57  ;;  %v5140_v4 = vsel %vm1957_vm4, %v4808_v23, %v3074_v32  ;;  %v5144_v60 = vsel %vm1924_vm3, %v6380_v45, %v2978_v38  ;;  %v6381_v9 = vpack.i.bf16 %v4852_v14, %v4803_v19  ;;  %v3082_v24 = vpop.permute.xlu1 %3081 }
  0xdc   : > { %v1775_v17 = vrot.slane %v4878_v27, 2  ;;  %v1776_v21 = vrot.slane %v4880_v20, 2  ;;  %v6382_v57 = vunpack.c.l.bf16 %v4929_v12  ;;  %v5156_v32 = vsel %vm1957_vm4, %v4822_v42, %v3068_v10 }
  0xdd   : > { %3356 = vrot.lane.b32.xlu0 %v6381_v9, %s3556_s24  ;;  %v5160_v38 = vsel %vm1957_vm4, %v4825_v46, %v3069_v55  ;;  %v3084_v19 = vunpack.i.h.bf16 %v3082_v24  ;;  %v3083_v14 = vunpack.i.l.bf16 %v3082_v24  ;;  %v3077_v51 = vpop.permute.xlu0 %3076  ;;  %v6383_v59 = vpack.i.bf16 %v4872_v0, %v6338_v18  ;;  %v5181_v9 = vld [vmem:[%s3604_s19 + $0xc8] sm:$0x1] }
  0xde   : > { %v1778_v23 = vrot.slane %v6382_v57, 2  ;;  %v1735_v15 = vrot.slane %v4882_v31, 2  ;;  %v1736_v42 = vrot.slane %v4884_v34, 2  ;;  %v6384_v10 = vunpack.c.l.bf16 %v4955_v11  ;;  %v5184_v24 = vld [vmem:[%s3604_s19 + $0x68] sm:$0x1] }
  0xdf   : > { %3371 = vrot.lane.b32.xlu1 %v6383_v59, %s3556_s24  ;;  %v5174_v46 = vsel %vm1957_vm4, %v4839_v36, %v3083_v14  ;;  %v5178_v55 = vsel %vm1957_vm4, %v4836_v37, %v3084_v19  ;;  %v3079_v0 = vunpack.i.h.bf16 %v3077_v51  ;;  %v3078_v18 = vunpack.i.l.bf16 %v3077_v51  ;;  %v5190_v57 = vpop.permute.xlu1 %3091 }
  0xe0   : > { %v1738_v45 = vrot.slane %v6384_v10, 2  ;;  %6385 = vst [vmem:[#allocation11_spill] sm:$0xff] %v5178_v55  ;;  %v6386_v11 = vpack.i.bf16 %v4876_v53, %v6339_v6  ;;  %v5193_v36 = vsel %vm722_vm1, %v1775_v17, %v1776_v21  ;;  %v1780_v14 = vrot.slane %v4935_v43, 2  ;;  %v2593_v17 = vld [vmem:[%s3604_s19 + $0xbc] sm:$0x1]  ;;  %v6401_v55 = vld [vmem:[#allocation54_spill] sm:$0xff] }
  0xe1   : > { %v1781_v37 = vrot.slane %v4937_v40, 2  ;;  %v6387_v19 = vunpack.c.l.bf16 %v4973_v26  ;;  %v3014_v59 = vunpack.i.h.bf16 %v4847_v41  ;;  %v5202_v10 = vsel %vm1957_vm4, %v4859_v3, %v3078_v18 }
  0xe2   : > { %3366 = vrot.lane.b32.xlu0 %v6386_v11, %s3556_s24  ;;  %v5206_v53 = vsel %vm1957_vm4, %v4862_v44, %v3079_v0  ;;  %v5209_v6 = vsel %vm722_vm1, %v1776_v21, %v1778_v23  ;;  %v5212_v11 = vpop.permute.xlu0 %3086  ;;  %v6388_v26 = vpack.i.bf16 %v4880_v20, %v4878_v27  ;;  %v5222_v3 = vsel %vm722_vm1, %v1736_v42, %v1738_v45 }
  0xe3   : > { %v1783_v51 = vrot.slane %v6387_v19, 2  ;;  %v5219_v19 = vsel %vm722_vm1, %v1735_v15, %v1736_v42  ;;  %v6136_v44 = vunpack.c.l.bf16 %v5181_v9  ;;  %v6137_v0 = vunpack.c.l.bf16 %v5184_v24  ;;  %v5235_v15 = vpop.permute.xlu1 %3101 }
  0xe4   : > { %3381 = vrot.lane.b32.xlu1 %v6388_v26, %s3557_s25  ;;  %v3013_v21 = vunpack.i.l.bf16 %v4847_v41  ;;  %v1740_v23 = vrot.slane %v4947_v62, 2  ;;  %v1741_v18 = vrot.slane %v4949_v58, 2  ;;  %v6389_v12 = vunpack.c.l.bf16 %v5007_v50  ;;  %6391 = vst [vmem:[#allocation60_spill] sm:$0xff] %v5235_v15 }
  0xe5   : > { %v6390_v20 = vpack.i.bf16 %v4884_v34, %v4882_v31  ;;  %v5240_v45 = vsel %vm722_vm1, %v1780_v14, %v1781_v37  ;;  %v5243_v41 = vsel %vm722_vm1, %v1781_v37, %v1783_v51  ;;  %v393_v26 = vunpack.c.l.bf16 %v2593_v17  ;;  %v6396_v37 = vld [vmem:[#allocation52_spill] sm:$0xff]  ;;  %v6397_v17 = vld [vmem:[#allocation53_spill] sm:$0xff] }
  0xe6   : > { %v1743_v27 = vrot.slane %v6389_v12, 2  ;;  %v5247_v50 = vsel %vm1924_vm3, %v4888_v5, %v3014_v59  ;;  %v6393_v12 = vld [vmem:[#allocation50_spill] sm:$0xff]  ;;  %v6395_v14 = vpack.i.bf16 %v4937_v40, %v4935_v43  ;;  %v1118_v51 = vrot.slane %v6396_v37, 1 }
  0xe7   : > { %3376 = vrot.lane.b32.xlu0 %v6390_v20, %s3557_s25  ;;  %6392 = vst [vmem:[#allocation46_spill] sm:$0xff] %v5247_v50  ;;  %v3009_v22 = vunpack.i.h.bf16 %v6393_v12  ;;  %v3008_v31 = vunpack.i.l.bf16 %v6393_v12  ;;  %v5253_v20 = vpop.permute.xlu0 %3096  ;;  %v1119_v42 = vrot.slane %v6397_v17, 1  ;;  %v1121_v5 = vrot.slane %v6136_v44, 1  ;;  %v6398_v12 = vld [vmem:[#allocation7_spill] sm:$0xff]  ;;  %v3112_v44 = vpop.permute.xlu1 %3111  ;;  %v6403_v50 = vld [vmem:[#allocation58_spill] sm:$0xff] }
  0xe8   : > { %6394 = vst [vmem:[#allocation56_spill] sm:$0xff] %v5253_v20  ;;  %3391 = vrot.lane.b32.xlu1 %v6395_v14, %s3557_s25  ;;  %v1081_v59 = vrot.slane %v6137_v0, 1  ;;  %v5267_v34 = vsel %vm1924_vm3, %v6398_v12, %v3013_v21  ;;  %v5272_v40 = vsel %vm722_vm1, %v1740_v23, %v1741_v18  ;;  %v5275_v43 = vsel %vm722_vm1, %v1741_v18, %v1743_v27  ;;  %v6402_v21 = vld [vmem:[#allocation55_spill] sm:$0xff]  ;;  %v6404_v23 = vld [vmem:[#allocation28_spill] sm:$0xff] }
  0xe9   : > { %6399 = vst [vmem:[#allocation15_spill] sm:$0xff] %v5267_v34  ;;  %v6400_v14 = vpack.i.bf16 %v4949_v58, %v4947_v62  ;;  %v1116_v0 = vrot.slane %v393_v26, 1  ;;  %v1289_v20 = vrot.slane %v6401_v55, 2  ;;  %v1290_v12 = vrot.slane %v6402_v21, 2 }
  0xea   : > { %v1292_v15 = vrot.slane %v393_v26, 2  ;;  %v5285_v49 = vsel %vm1924_vm3, %v6403_v50, %v3008_v31  ;;  %v5289_v18 = vsel %vm1924_vm3, %v6404_v23, %v3009_v22  ;;  %v3114_v27 = vunpack.i.h.bf16 %v3112_v44  ;;  %v6406_v50 = vld [vmem:[#allocation23_spill] sm:$0xff] }
  0xeb   : > { %3386 = vrot.lane.b32.xlu0 %v6400_v14, %s3557_s25  ;;  %v3113_v34 = vunpack.i.l.bf16 %v3112_v44  ;;  %v3107_v52 = vpop.permute.xlu0 %3106  ;;  %v6405_v58 = vpack.i.bf16 %v5042_v13, %v5039_v35  ;;  %v3425_v62 = vpack.i.bf16 %v5275_v43, %v5272_v40  ;;  %v5298_v55 = vsel %vm545_vm0, %v1118_v51, %v1119_v42  ;;  %v6407_v44 = vld [vmem:[#allocation13_spill] sm:$0xff]  ;;  %v6408_v14 = vld [vmem:[#allocation10_spill] sm:$0xff] }
  0xec   : > { %v5301_v26 = vsel %vm545_vm0, %v1119_v42, %v1121_v5  ;;  %v5305_v22 = vsel %vm545_vm0, %v6406_v50, %v1081_v59  ;;  %v5313_v35 = vsel %vm1957_vm4, %v6408_v14, %v3114_v27  ;;  %v3109_v13 = vunpack.i.h.bf16 %v3107_v52  ;;  %v3122_v42 = vpop.permute.xlu1 %3121  ;;  %v6411_v27 = vld [vmem:[#allocation16_spill] sm:$0xff]  ;;  %v6414_v14 = vld [vmem:[#allocation2_spill] sm:$0xff] }
  0xed   : > { %3401 = vrot.lane.b32.xlu1 %v6405_v58, %s3558_s26  ;;  %v5309_v31 = vsel %vm1957_vm4, %v6407_v44, %v3113_v34  ;;  %v3108_v23 = vunpack.i.l.bf16 %v3107_v52  ;;  %v6409_v51 = vpack.i.bf16 %v5068_v8, %v5061_v33  ;;  %v6410_v5 = vrot.slane %v6402_v21, 1 }
  0xee   : > { %v5325_v34 = vsel %vm722_vm1, %v1289_v20, %v1290_v12  ;;  %v5328_v58 = vsel %vm722_vm1, %v1290_v12, %v1292_v15  ;;  %v1249_v50 = vrot.slane %v6411_v27, 2  ;;  %v5337_v8 = vsel %vm1957_vm4, %v4987_v29, %v3109_v13  ;;  %v6413_v12 = vld [vmem:[#allocation20_spill] sm:$0xff]  ;;  %v6417_v13 = vld [vmem:[#allocation6_spill] sm:$0xff] }
  0xef   : > { %3396 = vrot.lane.b32.xlu0 %v6409_v51, %s3558_s26  ;;  %v5322_v59 = vsel %vm545_vm0, %v6410_v5, %v1116_v0  ;;  %v5333_v52 = vsel %vm1957_vm4, %v4984_v2, %v3108_v23  ;;  %v3124_v33 = vunpack.i.h.bf16 %v3122_v42  ;;  %v3123_v21 = vunpack.i.l.bf16 %v3122_v42  ;;  %v3117_v44 = vpop.permute.xlu0 %3116 }
  0xf0   : > { %v3054_v0 = vunpack.i.h.bf16 %v5017_v54  ;;  %v3053_v20 = vunpack.i.l.bf16 %v5017_v54  ;;  %v6412_v15 = vpack.i.bf16 %v5093_v48, %v5090_v16  ;;  %v1250_v2 = vrot.slane %v6413_v12, 2  ;;  %v5360_v48 = vpop.permute.xlu1 %3131  ;;  %v6421_v12 = vld [vmem:[#allocation8_spill] sm:$0xff] }
  0xf1   : > { %v6415_v23 = vunpack.c.l.bf16 %v6414_v14  ;;  %v5350_v29 = vsel %vm1957_vm4, %v5004_v7, %v3123_v21  ;;  %v5354_v42 = vsel %vm1957_vm4, %v6417_v13, %v3124_v33  ;;  %v3119_v54 = vunpack.i.h.bf16 %v3117_v44  ;;  %v3525_v14 = vld [vmem:[%s6013_s1 + $0x10] ss:$0 sps:$4 sm:$0x33]  }
  0xf2   : > { %3411 = vrot.lane.b32.xlu1 %v6412_v15, %s3558_s26  ;;  %6416 = vst [vmem:[#allocation14_spill] sm:$0xff] %v5350_v29  ;;  %6418 = vst [vmem:[#allocation49_spill] sm:$0xff] %v5354_v42  ;;  %v3118_v5 = vunpack.i.l.bf16 %v3117_v44  ;;  %v6419_v16 = vpack.i.bf16 %v5132_v61, %v5129_v63  ;;  %v3440_v27 = vpack.i.bf16 %v5301_v26, %v5298_v55  ;;  %v1294_v33 = vrot.slane %v6396_v37, 2  ;;  %v6420_v15 = vld [vmem:[#allocation9_spill] sm:$0xff] }
  0xf3   : > { %v1252_v51 = vrot.slane %v6415_v23, 2  ;;  %v3435_v7 = vpack.i.bf16 %v5305_v22, %v5322_v59  ;;  %v3450_v21 = vpack.i.bf16 %v5328_v58, %v5325_v34  ;;  %v5375_v63 = vsel %vm1957_vm4, %v6421_v12, %v3119_v54  ;;  %v6424_v23 = vld [vmem:[#allocation59_spill] sm:$0xff]  ;;  %v6426_v12 = vld [vmem:[#allocation57_spill] sm:$0xff]  ;;  %2850 = vmatprep.subr.msk.bf16.mxu0 %vm2247_vm6, %v3525_v14  ;;  %2851 = vmatprep.subr.msk.bf16.mxu1 %vm2247_vm6, %v3525_v14 }
  0xf4   : > { %3406 = vrot.lane.b32.xlu0 %v6419_v16, %s3558_s26  ;;  %v5371_v44 = vsel %vm1957_vm4, %v6420_v15, %v3118_v5  ;;  %6422 = vst [vmem:[#allocation61_spill] sm:$0xff] %v5375_v63  ;;  %v1295_v61 = vrot.slane %v6397_v17, 2  ;;  %v6423_v55 = vunpack.c.l.bf16 %v5181_v9  ;;  %v3064_v13 = vunpack.i.h.bf16 %v6424_v23  ;;  %v5385_v16 = vpop.permute.xlu0 %3126  ;;  %v2642_v59 = vld [vmem:[%s3604_s19 + $0xcc] sm:$0xff]   ;;  %v6438_v63 = vld [vmem:[#allocation46_spill] sm:$0xff] }
  0xf5   : > { %v3063_v37 = vunpack.i.l.bf16 %v6424_v23  ;;  %v6425_v54 = vpack.i.bf16 %v5209_v6, %v5193_v36  ;;  %v5393_v17 = vsel %vm1957_vm4, %v5083_v1, %v3053_v20  ;;  %v5397_v9 = vsel %vm1957_vm4, %v5087_v28, %v3054_v0  ;;  %v3142_v1 = vpop.permute.xlu1 %3141  ;;  %v6429_v0 = vld [vmem:[#allocation32_spill] sm:$0xff] }
  0xf6   : > { %v1297_v26 = vrot.slane %v6423_v55, 2  ;;  %v5400_v5 = vsel %vm722_vm1, %v1249_v50, %v1250_v2  ;;  %v5403_v15 = vsel %vm722_vm1, %v1250_v2, %v1252_v51  ;;  %v3059_v55 = vunpack.i.h.bf16 %v6426_v12 }
  0xf7   : > { %3421 = vrot.lane.b32.xlu1 %v6425_v54, %s3559_s27  ;;  %v3058_v23 = vunpack.i.l.bf16 %v6426_v12  ;;  %v6427_v36 = vpack.i.bf16 %v5222_v3, %v5219_v19  ;;  %v6428_v6 = vunpack.c.l.bf16 %v5184_v24  ;;  %v3048_v50 = vunpack.i.l.bf16 %v6429_v0 }
  0xf8   : > { %v3144_v20 = vunpack.i.h.bf16 %v3142_v1  ;;  %v3143_v2 = vunpack.i.l.bf16 %v3142_v1  ;;  %v5415_v51 = vsel %vm722_vm1, %v1294_v33, %v1295_v61  ;;  %v1964_v19 = vsel %vm1957_vm4, %v5116_v47, %v3063_v37  ;;  %v3137_v3 = vpop.permute.xlu0 %3136  ;;  %v3526_v33 = vld [vmem:[%s6013_s1 + $0x8] sm:$0xff]   ;;  %v2786_v37 = vld [vmem:[%s3604_s19 + $0xc0] sm:$0xff]  }
  0xf9   : > { %3416 = vrot.lane.b32.xlu0 %v6427_v36, %s3559_s27  ;;  %v1257_v28 = vrot.slane %v6428_v6, 2  ;;  %v1965_v24 = vsel %vm1957_vm4, %v5112_v30, %v3064_v13  ;;  %v6430_v54 = vpack.i.bf16 %v5243_v41, %v5240_v45  ;;  %v5428_v12 = vsel %vm722_vm1, %v1295_v61, %v1297_v26  ;;  %v2782_v1 = vld [vmem:[%s3604_s19 + $0x60] sm:$0xff]   ;;  %v3152_v61 = vpop.permute.xlu1 %3151  ;;  %v6431_v26 = vld [vmem:[#allocation43_spill] sm:$0xff] }
  0xfa   : > { %v5434_v36 = vsel %vm1990_vm5, %v1964_v19, %v3143_v2  ;;  %v5437_v47 = vsel %vm1990_vm5, %v1965_v24, %v3144_v20  ;;  %v3139_v30 = vunpack.i.h.bf16 %v3137_v3  ;;  %v3138_v13 = vunpack.i.l.bf16 %v3137_v3  ;;  %v3527_v19 = vld [vmem:[%s6013_s1] sm:$0xff]  }
  0xfb   : > { %3431 = vrot.lane.b32.xlu1 %v6430_v54, %s3559_s27  ;;  %v1962_v45 = vsel %vm1957_vm4, %v5144_v60, %v3058_v23  ;;  %v1963_v41 = vsel %vm1957_vm4, %v5120_v25, %v3059_v55  ;;  %v5451_v6 = vsel %vm722_vm1, %v6431_v26, %v1257_v28  ;;  %v2249_v20 = vsel %vm2247_vm6, %v3525_v14, 0  ;;  %v5470_v28 = vld [vmem:[%s3604_s19 + $0xc8] sm:$0x1] }
  0xfc   : > { %v5455_v2 = vsel %vm1990_vm5, %v1962_v45, %v3138_v13  ;;  %v5458_v60 = vsel %vm1990_vm5, %v1963_v41, %v3139_v30  ;;  %v3154_v25 = vunpack.i.h.bf16 %v3152_v61  ;;  %v3153_v55 = vunpack.i.l.bf16 %v3152_v61  ;;  %2807 = vmatpush3.bf16.msra.mxu0 %v2249_v20  ;;  %2847 = vmatpush3.bf16.msra.mxu1 %v2249_v20  ;;  %v3147_v40 = vpop.permute.xlu0 %3146  ;;  %v5525_v45 = vld [vmem:[%s3604_s19 + $0xd4] sm:$0x1] }
  0xfd   : > { %3426 = vrot.lane.b32.xlu0 %v3425_v62, %s3559_s27  ;;  %v5461_v43 = vunpack.c.l.bf16 %v2786_v37  ;;  %v5463_v62 = vunpack.c.h.bf16 %v2786_v37  ;;  %v5465_v23 = vunpack.c.l.bf16 %v2782_v1  ;;  %v5467_v14 = vunpack.c.h.bf16 %v2782_v1  ;;  %2808 = vmatprep.subr.bf16.mxu0 %v3526_v33  ;;  %v5533_v41 = vld [vmem:[%s3604_s19 + $0x74] sm:$0x1] }
  0xfe   : > { %v5481_v24 = vsel %vm1990_vm5, %v5140_v4, %v3154_v25  ;;  %v3149_v3 = vunpack.i.h.bf16 %v3147_v40  ;;  %v3148_v54 = vunpack.i.l.bf16 %v3147_v40  ;;  %2845 = vmatprep.subr.bf16.mxu1 %v3526_v33  ;;  %v3049_v30 = vunpack.i.h.bf16 %v6429_v0 }
  0xff   : > { %3441 = vrot.lane.b32.xlu1 %v3440_v27, %s3555_s23  ;;  %v5477_v27 = vsel %vm1990_vm5, %v5136_v56, %v3153_v55  ;;  %v5486_v13 = vsel %vm1957_vm4, %v5097_v39, %v3048_v50  ;;  %v5492_v56 = vpop.permute.xlu1 %3161  ;;  %v3445_v4 = vpack.i.bf16 %v5403_v15, %v5400_v5  ;;  %v3460_v37 = vpack.i.bf16 %v5428_v12, %v5415_v51  ;;  %v5511_v5 = vld [vmem:[%s3604_s19 + $0x68] sm:$0x1] }
 0x100   : > { %v5500_v0 = vsel %vm1990_vm5, %v5156_v32, %v3148_v54  ;;  %v5504_v39 = vsel %vm1990_vm5, %v5160_v38, %v3149_v3  ;;  %v3163_v22 = vunpack.i.l.bf16 %v5492_v56  ;;  %v6140_v50 = vunpack.c.l.bf16 %v5470_v28  ;;  %2809 = vmatpush3.bf16.msra.mxu0 %v3526_v33  ;;  %2848 = vmatpush3.bf16.msra.mxu1 %v3526_v33  ;;  %v3157_v15 = vpop.permute.xlu0 %3156  ;;  %v6432_v32 = vld [vmem:[#allocation45_spill] sm:$0xff] }
 0x101   : > { %3436 = vrot.lane.b32.xlu0 %v3435_v7, %s3555_s23  ;;  %v2618_v7 = vld [vmem:[%s3604_s19 + $0x6c] sm:$0xff]   ;;  %v3455_v38 = vpack.i.bf16 %v5451_v6, %v6432_v32  ;;  %v3470_v51 = vpack.i.bf16 %v5463_v62, %v5461_v43  ;;  %v3465_v12 = vpack.i.bf16 %v5467_v14, %v5465_v23  ;;  %v1609_v1 = vrot.slane %v5461_v43, 1  ;;  %2810 = vmatprep.subr.bf16.mxu0 %v3527_v19 }
 0x102   : > { %v5529_v33 = vsel %vm1990_vm5, %v5174_v46, %v3163_v22  ;;  %v3159_v34 = vunpack.i.h.bf16 %v3157_v15  ;;  %v3158_v58 = vunpack.i.l.bf16 %v3157_v15  ;;  %2846 = vmatprep.subr.bf16.mxu1 %v3527_v19  ;;  %v5538_v26 = vunpack.c.l.bf16 %v2642_v59 }
 0x103   : > { %3451 = vrot.lane.b32.xlu1 %v3450_v21, %s3556_s24  ;;  %6433 = vst [vmem:[#allocation41_spill] sm:$0xff] %v5529_v33  ;;  %v1610_v21 = vrot.slane %v5463_v62, 1  ;;  %v5536_v61 = vpop.permute.xlu1 %3171  ;;  %v5540_v6 = vunpack.c.h.bf16 %v2642_v59  ;;  %v5542_v20 = vunpack.c.l.bf16 %v2618_v7  ;;  %v469_v46 = vunpack.c.l.bf16 %v5511_v5 }
 0x104   : > { %v5547_v25 = vsel %vm1990_vm5, %v5202_v10, %v3158_v58  ;;  %v5551_v55 = vsel %vm1990_vm5, %v5206_v53, %v3159_v34  ;;  %v1612_v40 = vrot.slane %v6140_v50, 1  ;;  %v496_v3 = vunpack.c.l.bf16 %v5525_v45  ;;  %2811 = vmatpush3.bf16.msra.mxu0 %v3527_v19  ;;  %2849 = vmatpush3.bf16.msra.mxu1 %v3527_v19  ;;  %v5558_v22 = vpop.permute.xlu0 %3166 }
 0x105   : > { %3446 = vrot.lane.b32.xlu0 %v3445_v4, %s3556_s24  ;;  %6434 = vst [vmem:[#allocation62_spill] sm:$0xff] %v5547_v25  ;;  %6435 = vst [vmem:[#allocation47_spill] sm:$0xff] %v5551_v55  ;;  %v3094_v54 = vunpack.i.h.bf16 %v5190_v57  ;;  %v3093_v4 = vunpack.i.l.bf16 %v5190_v57  ;;  %v5561_v10 = vunpack.c.h.bf16 %v2618_v7  ;;  %v472_v53 = vunpack.c.l.bf16 %v5533_v41  ;;  %v6436_v41 = vld [vmem:[#allocation12_spill] sm:$0xff] }
 0x106   : > { %v3089_v59 = vunpack.i.h.bf16 %v5212_v11  ;;  %v3088_v5 = vunpack.i.l.bf16 %v5212_v11  ;;  %v1611_v15 = vsel %vm545_vm0, %v1609_v1, %v1610_v21  ;;  %v1569_v19 = vrot.slane %v5465_v23, 1 }
 0x107   : > { %3461 = vrot.lane.b32.xlu1 %v3460_v37, %s3556_s24  ;;  %v5569_v32 = vpop.permute.xlu1 %3181  ;;  %v1570_v57 = vrot.slane %v5467_v14, 1  ;;  %v1572_v45 = vrot.slane %v469_v46, 1  ;;  %v1614_v37 = vrot.slane %v5538_v26, 1  ;;  %v1615_v7 = vrot.slane %v5540_v6, 1 }
 0x108   : > { %v1613_v34 = vsel %vm545_vm0, %v1610_v21, %v1612_v40  ;;  %v1617_v58 = vrot.slane %v496_v3, 1  ;;  %v1574_v11 = vrot.slane %v5542_v20, 1  ;;  %v1575_v1 = vrot.slane %v5561_v10, 1  ;;  %v6437_v40 = vld [vmem:[#allocation15_spill] sm:$0xff] }
 0x109   : > { %3456 = vrot.lane.b32.xlu0 %v3455_v38, %s3556_s24  ;;  %v5579_v50 = vsel %vm1957_vm4, %v6436_v41, %v3049_v30  ;;  %v5581_v38 = vpop.permute.xlu0 %3176  ;;  %v3480_v33 = vpack.i.bf16 %v5540_v6, %v5538_v26  ;;  %v3475_v55 = vpack.i.bf16 %v5561_v10, %v5542_v20  ;;  %v1577_v21 = vrot.slane %v472_v53, 1 }
 0x10a   : > { %v5590_v25 = vsel %vm1957_vm4, %v6437_v40, %v3093_v4  ;;  %v5594_v42 = vsel %vm1957_vm4, %v6438_v63, %v3094_v54  ;;  %v5598_v30 = vsel %vm1957_vm4, %v5285_v49, %v3088_v5  ;;  %v3490_v29 = vpack.i.bf16 %v1613_v34, %v1611_v15 }
 0x10b   : > { %3471 = vrot.lane.b32.xlu1 %v3470_v51, %s3557_s25  ;;  %v5602_v51 = vsel %vm1957_vm4, %v5289_v18, %v3089_v59  ;;  %v5605_v41 = vpop.permute.xlu1 %3191  ;;  %v1571_v4 = vsel %vm545_vm0, %v1569_v19, %v1570_v57  ;;  %v1573_v40 = vsel %vm545_vm0, %v1570_v57, %v1572_v45  ;;  %v1616_v63 = vsel %vm545_vm0, %v1614_v37, %v1615_v7 }
 0x10c   : > { %v1618_v54 = vsel %vm545_vm0, %v1615_v7, %v1617_v58  ;;  %v1576_v49 = vsel %vm545_vm0, %v1574_v11, %v1575_v1  ;;  %v1785_v5 = vrot.slane %v5461_v43, 2  ;;  %v1786_v18 = vrot.slane %v5463_v62, 2 }
 0x10d   : > { %3466 = vrot.lane.b32.xlu0 %v3465_v12, %s3557_s25  ;;  %v5614_v59 = vpop.permute.xlu0 %3186  ;;  %v1578_v12 = vsel %vm545_vm0, %v1575_v1, %v1577_v21  ;;  %v6439_v15 = vunpack.c.l.bf16 %v5470_v28  ;;  %v1745_v57 = vrot.slane %v5465_v23, 2  ;;  %v1746_v45 = vrot.slane %v5467_v14, 2 }
 0x10e   : > { %v1748_v37 = vrot.slane %v469_v46, 2  ;;  %v1790_v7 = vrot.slane %v5538_v26, 2  ;;  %v1791_v43 = vrot.slane %v5540_v6, 2  ;;  %v1793_v62 = vrot.slane %v496_v3, 2 }
 0x10f   : > { %3481 = vrot.lane.b32.xlu1 %v3480_v33, %s3557_s25  ;;  %v1788_v19 = vrot.slane %v6439_v15, 2  ;;  %v5625_v34 = vpop.permute.xlu1 %3201  ;;  %v3485_v33 = vpack.i.bf16 %v1573_v40, %v1571_v4  ;;  %v1750_v58 = vrot.slane %v5542_v20, 2  ;;  %v1751_v28 = vrot.slane %v5561_v10, 2 }
 0x110   : > { %v1753_v11 = vrot.slane %v472_v53, 2  ;;  %v3133_v23 = vunpack.i.l.bf16 %v5360_v48  ;;  %v3500_v14 = vpack.i.bf16 %v1618_v54, %v1616_v63  ;;  %v3495_v1 = vpack.i.bf16 %v1578_v12, %v1576_v49 }
 0x111   : > { %3476 = vrot.lane.b32.xlu0 %v3475_v55, %s3557_s25  ;;  %v1787_v46 = vsel %vm722_vm1, %v1785_v5, %v1786_v18  ;;  %v3134_v26 = vunpack.i.h.bf16 %v5360_v48  ;;  %v3128_v6 = vunpack.i.l.bf16 %v5385_v16  ;;  %v5633_v3 = vpop.permute.xlu0 %3196  ;;  %v1789_v55 = vsel %vm722_vm1, %v1786_v18, %v1788_v19 }
 0x112   : > { %v1747_v20 = vsel %vm722_vm1, %v1745_v57, %v1746_v45  ;;  %v3129_v10 = vunpack.i.h.bf16 %v5385_v16  ;;  %v1749_v53 = vsel %vm722_vm1, %v1746_v45, %v1748_v37  ;;  %v1792_v21 = vsel %vm722_vm1, %v1790_v7, %v1791_v43 }
 0x113   : > { %3491 = vrot.lane.b32.xlu1 %v3490_v29, %s3558_s26  ;;  %v1794_v4 = vsel %vm722_vm1, %v1791_v43, %v1793_v62  ;;  %v3164_v48 = vunpack.i.h.bf16 %v5492_v56  ;;  %v3173_v40 = vunpack.i.l.bf16 %v5536_v61  ;;  %v5645_v29 = vpop.permute.xlu1 %3211  ;;  %v5648_v63 = vsel %vm722_vm1, %v1750_v58, %v1751_v28 }
 0x114   : > { %v1754_v16 = vsel %vm722_vm1, %v1751_v28, %v1753_v11  ;;  %v1993_v54 = vsel %vm1990_vm5, %v5393_v17, %v3133_v23  ;;  %v3169_v49 = vunpack.i.h.bf16 %v5558_v22  ;;  %v3168_v5 = vunpack.i.l.bf16 %v5558_v22 }
 0x115   : > { %3486 = vrot.lane.b32.xlu0 %v3485_v33, %s3558_s26  ;;  %v3510_v56 = vpack.i.bf16 %v1789_v55, %v1787_v46  ;;  %v1994_v18 = vsel %vm1990_vm5, %v5397_v9, %v3134_v26  ;;  %v1991_v12 = vsel %vm1990_vm5, %v5486_v13, %v3128_v6  ;;  %v3184_v15 = vunpack.i.h.bf16 %v5569_v32  ;;  %v5661_v57 = vpop.permute.xlu0 %3206 }
 0x116   : > { %v3183_v19 = vunpack.i.l.bf16 %v5569_v32  ;;  %v1992_v17 = vsel %vm1990_vm5, %v5579_v50, %v3129_v10  ;;  %v3505_v22 = vpack.i.bf16 %v1749_v53, %v1747_v20  ;;  %v3520_v45 = vpack.i.bf16 %v1794_v4, %v1792_v21 }
 0x117   : > { %3501 = vrot.lane.b32.xlu1 %v3500_v14, %s3558_s26  ;;  %v3515_v37 = vpack.i.bf16 %v1754_v16, %v5648_v63  ;;  %v2007_v9 = vsel %vm1990_vm5, %v5598_v30, %v3164_v48  ;;  %v2010_v13 = vsel %vm1990_vm5, %v5594_v42, %v3173_v40  ;;  %v3179_v32 = vunpack.i.h.bf16 %v5581_v38  ;;  %v3222_v43 = vpop.permute.xlu1 %3221 }
 0x118   : > { %v3178_v7 = vunpack.i.l.bf16 %v5581_v38  ;;  %v2009_v50 = vsel %vm1990_vm5, %v5590_v25, %v3169_v49  ;;  %v2008_v62 = vsel %vm1990_vm5, %v5602_v51, %v3168_v5  ;;  %v3194_v33 = vunpack.i.h.bf16 %v5605_v41 }
 0x119   : > { %3496 = vrot.lane.b32.xlu0 %v3495_v1, %s3558_s26  ;;  %v3193_v30 = vunpack.i.l.bf16 %v5605_v41  ;;  %v2040_v42 = vsel %vm2023_vm7, %v2007_v9, %v3183_v19  ;;  %v2041_v58 = vsel %vm2023_vm7, %v2008_v62, %v3184_v15  ;;  %v3189_v38 = vunpack.i.h.bf16 %v5614_v59  ;;  %v3217_v11 = vpop.permute.xlu0 %3216 }
 0x11a   : > { %v3188_v28 = vunpack.i.l.bf16 %v5614_v59  ;;  %v3204_v25 = vunpack.i.h.bf16 %v5625_v34  ;;  %v3203_v23 = vunpack.i.l.bf16 %v5625_v34  ;;  %v3199_v51 = vunpack.i.h.bf16 %v5633_v3 }
 0x11b   : > { %3511 = vrot.lane.b32.xlu1 %v3510_v56, %s3559_s27  ;;  %v3198_v14 = vunpack.i.l.bf16 %v5633_v3  ;;  %v2024_v41 = vsel %vm2023_vm7, %v1991_v12, %v3178_v7  ;;  %v2025_v1 = vsel %vm2023_vm7, %v1992_v17, %v3179_v32  ;;  %v3214_v46 = vunpack.i.h.bf16 %v5645_v29  ;;  %v3232_v26 = vpop.permute.xlu1 %3231 }
 0x11c   : > { %v3213_v59 = vunpack.i.l.bf16 %v5645_v29  ;;  %v2042_v6 = vsel %vm2023_vm7, %v2009_v50, %v3193_v30  ;;  %v2043_v34 = vsel %vm2023_vm7, %v2010_v13, %v3194_v33  ;;  %v3208_v55 = vunpack.i.l.bf16 %v5661_v57 }
 0x11d   : > { %3506 = vrot.lane.b32.xlu0 %v3505_v22, %s3559_s27  ;;  %v3223_v20 = vunpack.i.l.bf16 %v3222_v43  ;;  %v2026_v3 = vsel %vm2023_vm7, %v1993_v54, %v3188_v28  ;;  %v2027_v10 = vsel %vm2023_vm7, %v1994_v18, %v3189_v38  ;;  %v3224_v53 = vunpack.i.h.bf16 %v3222_v43  ;;  %v3227_v4 = vpop.permute.xlu0 %3226 }
 0x11e   : > { %v3218_v21 = vunpack.i.l.bf16 %v3217_v11  ;;  %v2073_v48 = vsel %vm2056_vm8, %v2040_v42, %v3203_v23  ;;  %v2074_v40 = vsel %vm2056_vm8, %v2041_v58, %v3204_v25  ;;  %v2057_v29 = vsel %vm2056_vm8, %v2024_v41, %v3198_v14 }
 0x11f   : > { %3521 = vrot.lane.b32.xlu1 %v3520_v45, %s3559_s27  ;;  %v2058_v63 = vsel %vm2056_vm8, %v2025_v1, %v3199_v51  ;;  %v2075_v16 = vsel %vm2056_vm8, %v2042_v6, %v3213_v59  ;;  %v2076_v49 = vsel %vm2056_vm8, %v2043_v34, %v3214_v46  ;;  %v3209_v54 = vunpack.i.h.bf16 %v5661_v57  ;;  %v3242_v56 = vpop.permute.xlu1 %3241 }
 0x120   : > { %v3219_v5 = vunpack.i.h.bf16 %v3217_v11  ;;  %v2059_v18 = vsel %vm2056_vm8, %v2026_v3, %v3208_v55  ;;  %v3244_v12 = vunpack.i.h.bf16 %v3242_v56  ;;  %v3243_v15 = vunpack.i.l.bf16 %v3242_v56 }
 0x121   : > { %3516 = vrot.lane.b32.xlu0 %v3515_v37, %s3559_s27  ;;  %v2106_v19 = vsel %vm2089_vm9, %v2073_v48, %v3223_v20  ;;  %v3234_v17 = vunpack.i.h.bf16 %v3232_v26  ;;  %v3233_v22 = vunpack.i.l.bf16 %v3232_v26  ;;  %v3237_v45 = vpop.permute.xlu0 %3236  ;;  %v2090_v9 = vsel %vm2089_vm9, %v2057_v29, %v3218_v21 }
 0x122   : > { %v2107_v13 = vsel %vm2089_vm9, %v2074_v40, %v3224_v53  ;;  %v3239_v32 = vunpack.i.h.bf16 %v3237_v45  ;;  %v3238_v7 = vunpack.i.l.bf16 %v3237_v45  ;;  %v2139_v57 = vsel %vm2122_vm10, %v2106_v19, %v3243_v15  ;;  %v6440_v40 = vld [vmem:[#allocation63_spill] sm:$0xff]  ;;  %v6443_v19 = vld [vmem:[#allocation24_spill] sm:$0xff] }
 0x123   : > { %v2140_v37 = vsel %vm2122_vm10, %v2107_v13, %v3244_v12  ;;  %v3229_v43 = vunpack.i.h.bf16 %v3227_v4  ;;  %v3228_v50 = vunpack.i.l.bf16 %v3227_v4  ;;  %v3252_v62 = vpop.permute.xlu1 %3251  ;;  %v2091_v33 = vsel %vm2089_vm9, %v2058_v63, %v3219_v5 }
 0x124   : > { %v2163_v30 = vpack.c.bf16 %v2140_v37, %v2139_v57  ;;  %v3254_v42 = vunpack.i.h.bf16 %v3252_v62  ;;  %v3253_v58 = vunpack.i.l.bf16 %v3252_v62  ;;  %v2123_v38 = vsel %vm2122_vm10, %v2090_v9, %v3238_v7  ;;  %v6445_v9 = vld [vmem:[#allocation3_spill] sm:$0xff]  ;;  %v6446_v57 = vld [vmem:[#allocation60_spill] sm:$0xff] }
 0x125   : > { %v2124_v28 = vsel %vm2122_vm10, %v2091_v33, %v3239_v32  ;;  %v2060_v11 = vsel %vm2056_vm8, %v2027_v10, %v3209_v54  ;;  %v2108_v25 = vsel %vm2089_vm9, %v2075_v16, %v3233_v22  ;;  %v2109_v23 = vsel %vm2089_vm9, %v2076_v49, %v3234_v17  ;;  %v3247_v51 = vpop.permute.xlu0 %3246  ;;  %v6441_v49 = vld [vmem:[#allocation38_spill] sm:$0xff] }
 0x126   : > { %v2155_v14 = vpack.c.bf16 %v2124_v28, %v2123_v38  ;;  %2828 = vmatprep.mubr.msk.bf16.mxu1 %vm2198_vm11, %v2163_v30  ;;  %v2141_v41 = vsel %vm2122_vm10, %v2108_v25, %v3253_v58  ;;  %v2142_v1 = vsel %vm2122_vm10, %v2109_v23, %v3254_v42  ;;  %v3249_v46 = vunpack.i.h.bf16 %v3247_v51  ;;  %v6444_v22 = vld [vmem:[#allocation22_spill] sm:$0xff]  ;;  %v6448_v30 = vld [vmem:[#allocation27_spill] sm:$0xff]  ;;  %v6449_v58 = vld [vmem:[#allocation25_spill] sm:$0xff] }
 0x127   : > { %v3248_v59 = vunpack.i.l.bf16 %v3247_v51  ;;  %v2092_v26 = vsel %vm2089_vm9, %v2059_v18, %v3228_v50  ;;  %v2093_v6 = vsel %vm2089_vm9, %v2060_v11, %v3229_v43  ;;  %v2164_v34 = vpack.c.bf16 %v2142_v1, %v2141_v41  ;;  %v5726_v55 = vpop.permute.xlu1 %3261  ;;  %v6442_v18 = vld [vmem:[#allocation51_spill] sm:$0xff]  ;;  %v6447_v50 = vld [vmem:[#allocation56_spill] sm:$0xff] }
 0x128   : > { %2812 = vmatprep.mubr.msk.bf16.mxu0 %vm2198_vm11, %v2155_v14  ;;  %v2126_v3 = vsel %vm2122_vm10, %v2093_v6, %v3249_v46  ;;  %v2944_v29 = vunpack.i.h.bf16 %v6440_v40  ;;  %v2943_v63 = vunpack.i.l.bf16 %v6440_v40  ;;  %v2939_v54 = vunpack.i.h.bf16 %v6441_v49 }
 0x129   : > { %v2125_v20 = vsel %vm2122_vm10, %v2092_v26, %v3248_v59  ;;  %v3257_v53 = vpop.permute.xlu0 %3256  ;;  %2829 = vmatmul.mubr.msk.bf16.vlgmr.msra.gmra.mxu1 %vm2198_vm11, %v2164_v34  ;;  %v2938_v5 = vunpack.i.l.bf16 %v6441_v49  ;;  %v3024_v12 = vunpack.i.h.bf16 %v6442_v18  ;;  %v3023_v15 = vunpack.i.l.bf16 %v6442_v18 }
 0x12a   : > { %v2156_v10 = vpack.c.bf16 %v2126_v3, %v2125_v20  ;;  %v1915_v17 = vsel %vm1891_vm2, %v6443_v19, %v2944_v29  ;;  %v1914_v45 = vsel %vm1891_vm2, %v6444_v22, %v2943_v63  ;;  %v3019_v13 = vunpack.i.h.bf16 %v6445_v9 }
 0x12b   : > { %v3272_v21 = vpop.permute.xlu1 %3271  ;;  %v3018_v32 = vunpack.i.l.bf16 %v6445_v9  ;;  %v3104_v37 = vunpack.i.h.bf16 %v6446_v57  ;;  %v3103_v43 = vunpack.i.l.bf16 %v6446_v57  ;;  %v3099_v62 = vunpack.i.h.bf16 %v6447_v50 }
 0x12c   : > { %2813 = vmatmul.mubr.msk.bf16.vlgmr.msra.gmra.mxu0 %vm2198_vm11, %v2156_v10  ;;  %v3098_v33 = vunpack.i.l.bf16 %v6447_v50  ;;  %v1913_v42 = vsel %vm1891_vm2, %v6448_v30, %v2939_v54  ;;  %v1912_v38 = vsel %vm1891_vm2, %v6449_v58, %v2938_v5  ;;  %v3174_v28 = vunpack.i.h.bf16 %v5536_v61 }
 0x12d   : > { %v3267_v4 = vpop.permute.xlu0 %3266  ;;  %v3263_v11 = vunpack.i.l.bf16 %v5726_v55  ;;  %v1948_v23 = vsel %vm1924_vm3, %v1915_v17, %v3024_v12  ;;  %v1947_v51 = vsel %vm1924_vm3, %v1914_v45, %v3023_v15  ;;  %v3259_v14 = vunpack.i.h.bf16 %v3257_v53 }
 0x12e   : > { %v3258_v41 = vunpack.i.l.bf16 %v3257_v53  ;;  %v1945_v1 = vsel %vm1924_vm3, %v1912_v38, %v3018_v32  ;;  %v1946_v46 = vsel %vm1924_vm3, %v1913_v42, %v3019_v13  ;;  %v3274_v59 = vunpack.i.h.bf16 %v3272_v21 }
 0x12f   : > { %v3282_v48 = vpop.permute.xlu1 %3281  ;;  %v3273_v26 = vunpack.i.l.bf16 %v3272_v21  ;;  %v1980_v34 = vsel %vm1957_vm4, %v1947_v51, %v3103_v43  ;;  %v1981_v61 = vsel %vm1957_vm4, %v1948_v23, %v3104_v37  ;;  %v1978_v20 = vsel %vm1957_vm4, %v1945_v1, %v3098_v33 }
 0x130   : > { %v1979_v3 = vsel %vm1957_vm4, %v1946_v46, %v3099_v62  ;;  %v2011_v10 = vsel %vm1990_vm5, %v1978_v20, %v3174_v28  ;;  %v2014_v53 = vsel %vm1990_vm5, %v1981_v61, %v3263_v11  ;;  %v3269_v40 = vunpack.i.h.bf16 %v3267_v4 }
 0x131   : > { %v5734_v16 = vpop.permute.xlu0 %3276  ;;  %v3268_v29 = vunpack.i.l.bf16 %v3267_v4  ;;  %v2013_v49 = vsel %vm1990_vm5, %v1980_v34, %v3259_v14  ;;  %v2012_v21 = vsel %vm1990_vm5, %v1979_v3, %v3258_v41  ;;  %v3284_v54 = vunpack.i.h.bf16 %v3282_v48 }
 0x132   : > { %v3283_v5 = vunpack.i.l.bf16 %v3282_v48  ;;  %v2044_v18 = vsel %vm2023_vm7, %v2011_v10, %v3273_v26  ;;  %v2045_v12 = vsel %vm2023_vm7, %v2012_v21, %v3274_v59  ;;  %v3279_v15 = vunpack.i.h.bf16 %v5734_v16 }
 0x133   : > { %v5738_v56 = vpop.permute.xlu1 %3291  ;;  %v3278_v19 = vunpack.i.l.bf16 %v5734_v16  ;;  %v2028_v13 = vsel %vm2023_vm7, %v5455_v2, %v3268_v29  ;;  %v2029_v48 = vsel %vm2023_vm7, %v5458_v60, %v3269_v40  ;;  %v2047_v16 = vsel %vm2023_vm7, %v2014_v53, %v3284_v54 }
 0x134   : > { %v3294_v22 = vunpack.i.h.bf16 %v5738_v56  ;;  %v3293_v4 = vunpack.i.l.bf16 %v5738_v56  ;;  %v2046_v43 = vsel %vm2023_vm7, %v2013_v49, %v3283_v5  ;;  %v2031_v56 = vsel %vm2023_vm7, %v5437_v47, %v3279_v15 }
 0x135   : > { %v3287_v7 = vpop.permute.xlu0 %3286 }
 0x136   : > { %v3289_v45 = vunpack.i.h.bf16 %v3287_v7  ;;  %v3288_v9 = vunpack.i.l.bf16 %v3287_v7  ;;  %v2030_v7 = vsel %vm2023_vm7, %v5434_v36, %v3278_v19  ;;  %v2077_v60 = vsel %vm2056_vm8, %v2044_v18, %v3293_v4 }
 0x137   : > { %v3302_v25 = vpop.permute.xlu1 %3301  ;;  %v2078_v42 = vsel %vm2056_vm8, %v2045_v12, %v3294_v22 }
 0x138   : > { %v3304_v32 = vunpack.i.h.bf16 %v3302_v25  ;;  %v3303_v57 = vunpack.i.l.bf16 %v3302_v25  ;;  %v2061_v58 = vsel %vm2056_vm8, %v2028_v13, %v3288_v9  ;;  %v2062_v38 = vsel %vm2056_vm8, %v2029_v48, %v3289_v45 }
 0x139   : > { %v5762_v6 = vpop.permute.xlu0 %3296 }
 0x13a   : > { %v3298_v50 = vunpack.i.l.bf16 %v5762_v6  ;;  %v2079_v28 = vsel %vm2056_vm8, %v2046_v43, %v3303_v57  ;;  %v2080_v11 = vsel %vm2056_vm8, %v2047_v16, %v3304_v32  ;;  %v3299_v47 = vunpack.i.h.bf16 %v5762_v6 }
 0x13b   : > { %v3312_v63 = vpop.permute.xlu1 %3311 }
 0x13c   : > { %v3313_v62 = vunpack.i.l.bf16 %v3312_v63  ;;  %v3314_v2 = vunpack.i.h.bf16 %v3312_v63  ;;  %v2063_v36 = vsel %vm2056_vm8, %v2030_v7, %v3298_v50  ;;  %v2064_v18 = vsel %vm2056_vm8, %v2031_v56, %v3299_v47 }
 0x13d   : > { %v3307_v17 = vpop.permute.xlu0 %3306 }
 0x13e   : > { %v3308_v33 = vunpack.i.l.bf16 %v3307_v17  ;;  %v3309_v25 = vunpack.i.h.bf16 %v3307_v17  ;;  %v2110_v51 = vsel %vm2089_vm9, %v2077_v60, %v3313_v62  ;;  %v2111_v1 = vsel %vm2089_vm9, %v2078_v42, %v3314_v2 }
 0x13f   : > { %v3322_v37 = vpop.permute.xlu1 %3321  ;;  %v3264_v60 = vunpack.i.h.bf16 %v5726_v55 }
 0x140   : > { %v2094_v46 = vsel %vm2089_vm9, %v2061_v58, %v3308_v33  ;;  %v3324_v59 = vunpack.i.h.bf16 %v3322_v37  ;;  %v3323_v26 = vunpack.i.l.bf16 %v3322_v37  ;;  %v2095_v10 = vsel %vm2089_vm9, %v2062_v38, %v3309_v25 }
 0x141   : > { %v3317_v30 = vpop.permute.xlu0 %3316 }
 0x142   : > { %v3319_v53 = vunpack.i.h.bf16 %v3317_v30  ;;  %v3318_v40 = vunpack.i.l.bf16 %v3317_v30  ;;  %v2112_v12 = vsel %vm2089_vm9, %v2079_v28, %v3323_v26  ;;  %v2113_v15 = vsel %vm2089_vm9, %v2080_v11, %v3324_v59 }
 0x143   : > { %v3332_v23 = vpop.permute.xlu1 %3331 }
 0x144   : > { %v3334_v14 = vunpack.i.h.bf16 %v3332_v23  ;;  %v3333_v41 = vunpack.i.l.bf16 %v3332_v23  ;;  %v2096_v13 = vsel %vm2089_vm9, %v2063_v36, %v3318_v40  ;;  %v2097_v48 = vsel %vm2089_vm9, %v2064_v18, %v3319_v53 }
 0x145   : > { %v3327_v34 = vpop.permute.xlu0 %3326  ;;  %v2015_v23 = vsel %vm1990_vm5, %v5333_v52, %v3264_v60 }
 0x146   : > { %v2143_v61 = vsel %vm2122_vm10, %v2110_v51, %v3333_v41  ;;  %v2144_v20 = vsel %vm2122_vm10, %v2111_v1, %v3334_v14  ;;  %v3329_v6 = vunpack.i.h.bf16 %v3327_v34  ;;  %v3328_v3 = vunpack.i.l.bf16 %v3327_v34 }
 0x147   : > { %v2165_v29 = vpack.c.bf16 %v2144_v20, %v2143_v61  ;;  %v3342_v63 = vpop.permute.xlu1 %3341 }
 0x148   : > { %v2127_v49 = vsel %vm2122_vm10, %v2094_v46, %v3328_v3  ;;  %v2128_v21 = vsel %vm2122_vm10, %v2095_v10, %v3329_v6  ;;  %v3344_v54 = vunpack.i.h.bf16 %v3342_v63  ;;  %v3343_v5 = vunpack.i.l.bf16 %v3342_v63 }
 0x149   : > { %v2157_v19 = vpack.c.bf16 %v2128_v21, %v2127_v49  ;;  %v3337_v17 = vpop.permute.xlu0 %3336  ;;  %2832 = vmatprep.mubr.msk.bf16.mxu1 %vm2198_vm11, %v2165_v29 }
 0x14a   : > { %v2145_v22 = vsel %vm2122_vm10, %v2112_v12, %v3343_v5  ;;  %v2146_v4 = vsel %vm2122_vm10, %v2113_v15, %v3344_v54  ;;  %v3339_v45 = vunpack.i.h.bf16 %v3337_v17  ;;  %v3338_v9 = vunpack.i.l.bf16 %v3337_v17 }
 0x14b   : > { %v2166_v32 = vpack.c.bf16 %v2146_v4, %v2145_v22  ;;  %2816 = vmatprep.mubr.msk.bf16.mxu0 %vm2198_vm11, %v2157_v19  ;;  %v5814_v57 = vpop.permute.xlu1 %3351 }
 0x14c   : > { %v2129_v37 = vsel %vm2122_vm10, %v2096_v13, %v3338_v9  ;;  %v2130_v43 = vsel %vm2122_vm10, %v2097_v48, %v3339_v45  ;;  %v3353_v42 = vunpack.i.l.bf16 %v5814_v57 }
 0x14d   : > { %v2158_v16 = vpack.c.bf16 %v2130_v43, %v2129_v37  ;;  %v3347_v50 = vpop.permute.xlu0 %3346  ;;  %2833 = vmatmul.mubr.msk.bf16.gmra.mxu1 %vm2198_vm11, %v2166_v32 }
 0x14e   : > { %v3349_v38 = vunpack.i.h.bf16 %v3347_v50  ;;  %v3348_v28 = vunpack.i.l.bf16 %v3347_v50  ;;  %v2018_v36 = vsel %vm1990_vm5, %v5313_v35, %v3353_v42 }
 0x14f   : > { %2817 = vmatmul.mubr.msk.bf16.gmra.mxu0 %vm2198_vm11, %v2158_v16  ;;  %v3362_v62 = vpop.permute.xlu1 %3361 }
 0x150   : > { %v3364_v11 = vunpack.i.h.bf16 %v3362_v62  ;;  %v3363_v47 = vunpack.i.l.bf16 %v3362_v62  ;;  %v2017_v55 = vsel %vm1990_vm5, %v5309_v31, %v3349_v38  ;;  %v2016_v1 = vsel %vm1990_vm5, %v5337_v8, %v3348_v28 }
 0x151   : > { %v3357_v56 = vpop.permute.xlu0 %3356 }
 0x152   : > { %v3359_v51 = vunpack.i.h.bf16 %v3357_v56  ;;  %v3358_v14 = vunpack.i.l.bf16 %v3357_v56  ;;  %v2048_v26 = vsel %vm2023_vm7, %v2015_v23, %v3363_v47  ;;  %v2049_v34 = vsel %vm2023_vm7, %v2016_v1, %v3364_v11 }
 0x153   : > { %v3372_v7 = vpop.permute.xlu1 %3371 }
 0x154   : > { %v3374_v46 = vunpack.i.h.bf16 %v3372_v7  ;;  %v3373_v59 = vunpack.i.l.bf16 %v3372_v7  ;;  %v2032_v53 = vsel %vm2023_vm7, %v5500_v0, %v3358_v14  ;;  %v2033_v31 = vsel %vm2023_vm7, %v5504_v39, %v3359_v51 }
 0x155   : > { %v3367_v2 = vpop.permute.xlu0 %3366 }
 0x156   : > { %v3369_v61 = vunpack.i.h.bf16 %v3367_v2  ;;  %v3368_v52 = vunpack.i.l.bf16 %v3367_v2  ;;  %v2050_v63 = vsel %vm2023_vm7, %v2017_v55, %v3373_v59  ;;  %v2051_v49 = vsel %vm2023_vm7, %v2018_v36, %v3374_v46 }
 0x157   : > { %v3382_v33 = vpop.permute.xlu1 %3381 }
 0x158   : > { %v3384_v6 = vunpack.i.h.bf16 %v3382_v33  ;;  %v3383_v35 = vunpack.i.l.bf16 %v3382_v33  ;;  %v2035_v5 = vsel %vm2023_vm7, %v5481_v24, %v3369_v61  ;;  %v2034_v18 = vsel %vm2023_vm7, %v5477_v27, %v3368_v52 }
 0x159   : > { %v3377_v30 = vpop.permute.xlu0 %3376 }
 0x15a   : > { %v3379_v3 = vunpack.i.h.bf16 %v3377_v30  ;;  %v3378_v10 = vunpack.i.l.bf16 %v3377_v30  ;;  %v2081_v39 = vsel %vm2056_vm8, %v2048_v26, %v3383_v35  ;;  %v2082_v19 = vsel %vm2056_vm8, %v2049_v34, %v3384_v6 }
 0x15b   : > { %v3392_v58 = vpop.permute.xlu1 %3391 }
 0x15c   : > { %v3394_v8 = vunpack.i.h.bf16 %v3392_v58  ;;  %v3393_v40 = vunpack.i.l.bf16 %v3392_v58  ;;  %v2065_v17 = vsel %vm2056_vm8, %v2032_v53, %v3378_v10  ;;  %v2066_v22 = vsel %vm2056_vm8, %v2033_v31, %v3379_v3 }
 0x15d   : > { %v5822_v25 = vpop.permute.xlu0 %3386 }
 0x15e   : > { %v3388_v21 = vunpack.i.l.bf16 %v5822_v25  ;;  %v2083_v4 = vsel %vm2056_vm8, %v2050_v63, %v3393_v40  ;;  %v2084_v45 = vsel %vm2056_vm8, %v2051_v49, %v3394_v8  ;;  %v3389_v24 = vunpack.i.h.bf16 %v5822_v25 }
 0x15f   : > { %v3402_v41 = vpop.permute.xlu1 %3401  ;;  %v3354_v49 = vunpack.i.h.bf16 %v5814_v57 }
 0x160   : > { %v3403_v54 = vunpack.i.l.bf16 %v3402_v41  ;;  %v3404_v0 = vunpack.i.h.bf16 %v3402_v41  ;;  %v2067_v27 = vsel %vm2056_vm8, %v2034_v18, %v3388_v21  ;;  %v2068_v36 = vsel %vm2056_vm8, %v2035_v5, %v3389_v24 }
 0x161   : > { %v3397_v20 = vpop.permute.xlu0 %3396 }
 0x162   : > { %v3398_v12 = vunpack.i.l.bf16 %v3397_v20  ;;  %v3399_v9 = vunpack.i.h.bf16 %v3397_v20  ;;  %v2114_v48 = vsel %vm2089_vm9, %v2081_v39, %v3403_v54  ;;  %v2115_v43 = vsel %vm2089_vm9, %v2082_v19, %v3404_v0 }
 0x163   : > { %v2019_v19 = vsel %vm1990_vm5, %v5371_v44, %v3354_v49 }
 0x164   : > { %v3412_v29 = vpop.permute.xlu1 %3411  ;;  %v2098_v16 = vsel %vm2089_vm9, %v2065_v17, %v3398_v12  ;;  %v2099_v60 = vsel %vm2089_vm9, %v2066_v22, %v3399_v9  ;;  %v6450_v17 = vld [vmem:[#allocation14_spill] sm:$0xff] }
 0x165   : > { %v3414_v50 = vunpack.i.h.bf16 %v3412_v29  ;;  %v3413_v62 = vunpack.i.l.bf16 %v3412_v29 }
 0x166   : > { %v3407_v15 = vpop.permute.xlu0 %3406 }
 0x167   : > { %v3409_v42 = vunpack.i.h.bf16 %v3407_v15  ;;  %v3408_v58 = vunpack.i.l.bf16 %v3407_v15  ;;  %v2116_v51 = vsel %vm2089_vm9, %v2083_v4, %v3413_v62  ;;  %v2117_v14 = vsel %vm2089_vm9, %v2084_v45, %v3414_v50  ;;  %v6451_v4 = vld [vmem:[#allocation49_spill] sm:$0xff] }
 0x169   : > { %v3422_v13 = vpop.permute.xlu1 %3421  ;;  %v2100_v34 = vsel %vm2089_vm9, %v2067_v27, %v3408_v58  ;;  %v2101_v61 = vsel %vm2089_vm9, %v2068_v36, %v3409_v42  ;;  %v6455_v58 = vld [vmem:[#allocation47_spill] sm:$0xff] }
 0x16a   : > { %v3424_v32 = vunpack.i.h.bf16 %v3422_v13  ;;  %v3423_v37 = vunpack.i.l.bf16 %v3422_v13  ;;  %v6452_v13 = vld [vmem:[#allocation11_spill] sm:$0xff] }
 0x16b   : > { %v3417_v56 = vpop.permute.xlu0 %3416 }
 0x16c   : > { %v2147_v7 = vsel %vm2122_vm10, %v2114_v48, %v3423_v37  ;;  %v2148_v2 = vsel %vm2122_vm10, %v2115_v43, %v3424_v32  ;;  %v3419_v33 = vunpack.i.h.bf16 %v3417_v56  ;;  %v3418_v30 = vunpack.i.l.bf16 %v3417_v56  ;;  %v6453_v48 = vld [vmem:[#allocation61_spill] sm:$0xff] }
 0x16d   : > { %v2167_v38 = vpack.c.bf16 %v2148_v2, %v2147_v7  ;;  %v3432_v28 = vpop.permute.xlu1 %3431 }
 0x16e   : > { %v2131_v11 = vsel %vm2122_vm10, %v2098_v16, %v3418_v30  ;;  %v2132_v47 = vsel %vm2122_vm10, %v2099_v60, %v3419_v33  ;;  %v3434_v25 = vunpack.i.h.bf16 %v3432_v28  ;;  %v3433_v23 = vunpack.i.l.bf16 %v3432_v28  ;;  %v6454_v60 = vld [vmem:[#allocation62_spill] sm:$0xff] }
 0x16f   : > { %v2159_v41 = vpack.c.bf16 %v2132_v47, %v2131_v11  ;;  %v3427_v55 = vpop.permute.xlu0 %3426  ;;  %2836 = vmatprep.mubr.msk.bf16.mxu1 %vm2198_vm11, %v2167_v38 }
 0x170   : > { %v2149_v1 = vsel %vm2122_vm10, %v2116_v51, %v3433_v23  ;;  %v2150_v46 = vsel %vm2122_vm10, %v2117_v14, %v3434_v25  ;;  %v3429_v59 = vunpack.i.h.bf16 %v3427_v55  ;;  %v3428_v26 = vunpack.i.l.bf16 %v3427_v55  ;;  %v6456_v14 = vld [vmem:[#allocation41_spill] sm:$0xff] }
 0x171   : > { %v2168_v52 = vpack.c.bf16 %v2150_v46, %v2149_v1  ;;  %2820 = vmatprep.mubr.msk.bf16.mxu0 %vm2198_vm11, %v2159_v41  ;;  %v3442_v20 = vpop.permute.xlu1 %3441 }
 0x172   : > { %v2133_v6 = vsel %vm2122_vm10, %v2100_v34, %v3428_v26  ;;  %v2134_v35 = vsel %vm2122_vm10, %v2101_v61, %v3429_v59  ;;  %v3444_v21 = vunpack.i.h.bf16 %v3442_v20  ;;  %v3443_v54 = vunpack.i.l.bf16 %v3442_v20 }
 0x173   : > { %v2160_v3 = vpack.c.bf16 %v2134_v35, %v2133_v6  ;;  %v3437_v10 = vpop.permute.xlu0 %3436  ;;  %2837 = vmatmul.mubr.msk.bf16.gmra.mxu1 %vm2198_vm11, %v2168_v52 }
 0x174   : > { %v3439_v18 = vunpack.i.h.bf16 %v3437_v10  ;;  %v3438_v0 = vunpack.i.l.bf16 %v3437_v10  ;;  %v2021_v22 = vsel %vm1990_vm5, %v6450_v17, %v3443_v54  ;;  %v2022_v45 = vsel %vm1990_vm5, %v6451_v4, %v3444_v21 }
 0x175   : > { %2821 = vmatmul.mubr.msk.bf16.gmra.mxu0 %vm2198_vm11, %v2160_v3  ;;  %v3452_v53 = vpop.permute.xlu1 %3451 }
 0x176   : > { %v3454_v12 = vunpack.i.h.bf16 %v3452_v53  ;;  %v3453_v15 = vunpack.i.l.bf16 %v3452_v53  ;;  %v2006_v27 = vsel %vm1990_vm5, %v6452_v13, %v3439_v18  ;;  %v2020_v32 = vsel %vm1990_vm5, %v6453_v48, %v3438_v0 }
 0x177   : > { %v3447_v31 = vpop.permute.xlu0 %3446 }
 0x178   : > { %v3449_v24 = vunpack.i.h.bf16 %v3447_v31  ;;  %v3448_v57 = vunpack.i.l.bf16 %v3447_v31  ;;  %v2052_v16 = vsel %vm2023_vm7, %v2019_v19, %v3453_v15  ;;  %v2053_v44 = vsel %vm2023_vm7, %v2020_v32, %v3454_v12 }
 0x179   : > { %v3462_v8 = vpop.permute.xlu1 %3461 }
 0x17a   : > { %v3464_v37 = vunpack.i.h.bf16 %v3462_v8  ;;  %v3463_v43 = vunpack.i.l.bf16 %v3462_v8  ;;  %v2036_v42 = vsel %vm2023_vm7, %v6454_v60, %v3448_v57  ;;  %v2037_v38 = vsel %vm2023_vm7, %v6455_v58, %v3449_v24 }
 0x17b   : > { %v3457_v40 = vpop.permute.xlu0 %3456 }
 0x17c   : > { %v3459_v50 = vunpack.i.h.bf16 %v3457_v40  ;;  %v3458_v62 = vunpack.i.l.bf16 %v3457_v40  ;;  %v2054_v25 = vsel %vm2023_vm7, %v2021_v22, %v3463_v43  ;;  %v2055_v23 = vsel %vm2023_vm7, %v2022_v45, %v3464_v37 }
 0x17d   : > { %v3472_v29 = vpop.permute.xlu1 %3471 }
 0x17e   : > { %v3474_v7 = vunpack.i.h.bf16 %v3472_v29  ;;  %v3473_v2 = vunpack.i.l.bf16 %v3472_v29  ;;  %v2038_v41 = vsel %vm2023_vm7, %v6456_v14, %v3458_v62  ;;  %v2039_v55 = vsel %vm2023_vm7, %v2006_v27, %v3459_v50 }
 0x17f   : > { %v3467_v63 = vpop.permute.xlu0 %3466 }
 0x180   : > { %v3469_v33 = vunpack.i.h.bf16 %v3467_v63  ;;  %v3468_v30 = vunpack.i.l.bf16 %v3467_v63  ;;  %v2085_v26 = vsel %vm2056_vm8, %v2052_v16, %v3473_v2  ;;  %v2086_v34 = vsel %vm2056_vm8, %v2053_v44, %v3474_v7 }
 0x181   : > { %v3482_v5 = vpop.permute.xlu1 %3481 }
 0x182   : > { %v3484_v28 = vunpack.i.h.bf16 %v3482_v5  ;;  %v3483_v11 = vunpack.i.l.bf16 %v3482_v5  ;;  %v2069_v61 = vsel %vm2056_vm8, %v2036_v42, %v3468_v30  ;;  %v2070_v52 = vsel %vm2056_vm8, %v2037_v38, %v3469_v33  ;;  %v5932_v30 = vld [vmem:[%s6014_s2] ss:$0 sm:$0xff] }
 0x183   : > { %v5875_v39 = vpop.permute.xlu0 %3476 }
 0x184   : > { %v3478_v36 = vunpack.i.l.bf16 %v5875_v39  ;;  %v2087_v20 = vsel %vm2056_vm8, %v2054_v25, %v3483_v11  ;;  %v2088_v6 = vsel %vm2056_vm8, %v2055_v23, %v3484_v28  ;;  %v3479_v35 = vunpack.i.h.bf16 %v5875_v39 }
 0x185   : > { %v3492_v9 = vpop.permute.xlu1 %3491 }
 0x186   : > { %v3493_v51 = vunpack.i.l.bf16 %v3492_v9  ;;  %v3494_v1 = vunpack.i.h.bf16 %v3492_v9  ;;  %v2071_v53 = vsel %vm2056_vm8, %v2038_v41, %v3478_v36  ;;  %v2072_v9 = vsel %vm2056_vm8, %v2039_v55, %v3479_v35 }
 0x187   : > { %v3487_v56 = vpop.permute.xlu0 %3486 }
 0x188   : > { %v3488_v46 = vunpack.i.l.bf16 %v3487_v56  ;;  %v3489_v3 = vunpack.i.h.bf16 %v3487_v56  ;;  %v2118_v31 = vsel %vm2089_vm9, %v2085_v26, %v3493_v51  ;;  %v2119_v29 = vsel %vm2089_vm9, %v2086_v34, %v3494_v1 }
 0x189   : > { %v3502_v47 = vpop.permute.xlu1 %3501 }
 0x18a   : > { %v2102_v63 = vsel %vm2089_vm9, %v2069_v61, %v3488_v46  ;;  %v3504_v49 = vunpack.i.h.bf16 %v3502_v47  ;;  %v3503_v21 = vunpack.i.l.bf16 %v3502_v47  ;;  %v2103_v15 = vsel %vm2089_vm9, %v2070_v52, %v3489_v3 }
 0x18b   : > { %v3497_v59 = vpop.permute.xlu0 %3496 }
 0x18c   : > { %v3499_v39 = vunpack.i.h.bf16 %v3497_v59  ;;  %v3498_v19 = vunpack.i.l.bf16 %v3497_v59  ;;  %v2120_v13 = vsel %vm2089_vm9, %v2087_v20, %v3503_v21  ;;  %v2121_v27 = vsel %vm2089_vm9, %v2088_v6, %v3504_v49 }
 0x18d   : > { %v3512_v10 = vpop.permute.xlu1 %3511 }
 0x18e   : > { %v3514_v8 = vunpack.i.h.bf16 %v3512_v10  ;;  %v3513_v40 = vunpack.i.l.bf16 %v3512_v10  ;;  %v2104_v50 = vsel %vm2089_vm9, %v2071_v53, %v3498_v19  ;;  %v2105_v62 = vsel %vm2089_vm9, %v2072_v9, %v3499_v39 }
 0x18f   : > { %v3507_v54 = vpop.permute.xlu0 %3506 }
 0x190   : > { %v2151_v5 = vsel %vm2122_vm10, %v2118_v31, %v3513_v40  ;;  %v2152_v18 = vsel %vm2122_vm10, %v2119_v29, %v3514_v8  ;;  %v3509_v0 = vunpack.i.h.bf16 %v3507_v54  ;;  %v3508_v12 = vunpack.i.l.bf16 %v3507_v54 }
 0x191   : > { %v2169_v17 = vpack.c.bf16 %v2152_v18, %v2151_v5  ;;  %v3522_v22 = vpop.permute.xlu1 %3521 }
 0x192   : > { %v2135_v4 = vsel %vm2122_vm10, %v2102_v63, %v3508_v12  ;;  %v2136_v45 = vsel %vm2122_vm10, %v2103_v15, %v3509_v0  ;;  %v3524_v24 = vunpack.i.h.bf16 %v3522_v22  ;;  %v3523_v57 = vunpack.i.l.bf16 %v3522_v22 }
 0x193   : > { %v2161_v48 = vpack.c.bf16 %v2136_v45, %v2135_v4  ;;  %v3517_v32 = vpop.permute.xlu0 %3516  ;;  %2840 = vmatprep.mubr.msk.bf16.mxu1 %vm2198_vm11, %v2169_v17 }
 0x194   : > { %v2153_v37 = vsel %vm2122_vm10, %v2120_v13, %v3523_v57  ;;  %v2154_v43 = vsel %vm2122_vm10, %v2121_v27, %v3524_v24  ;;  %v3519_v16 = vunpack.i.h.bf16 %v3517_v32  ;;  %v3518_v44 = vunpack.i.l.bf16 %v3517_v32 }
 0x195   : > { %v2170_v56 = vpack.c.bf16 %v2154_v43, %v2153_v37  ;;  %2824 = vmatprep.mubr.msk.bf16.mxu0 %vm2198_vm11, %v2161_v48 }
 0x196   : > { %v2137_v7 = vsel %vm2122_vm10, %v2104_v50, %v3518_v44  ;;  %v2138_v2 = vsel %vm2122_vm10, %v2105_v62, %v3519_v16 }
 0x197   : > { %v2162_v33 = vpack.c.bf16 %v2138_v2, %v2137_v7  ;;  %2841 = vmatmul.mubr.msk.bf16.gmra.mxu1 %vm2198_vm11, %v2170_v56 }
 0x199   : > { %2825 = vmatmul.mubr.msk.bf16.gmra.mxu0 %vm2198_vm11, %v2162_v33 }
 0x1e9   : > { %v2830_v60 = vpop.f32.mrf.mxu1 }
 0x1ea   : > { %v2358_v42 = vadd.f32 %v2830_v60, %v5932_v30 }
 0x1eb   : > { %v2349_v38 = vpop.f32.mrf.mxu1 }
 0x1ec   : > { %v2814_v58 = vpop.f32.mrf.mxu0  ;;  %2430 = vst [vmem:[%s5937_s16 + $0x90] sm:$0xff] %v2358_v42  ;;  %v2350_v11 = vadd.f32 %v5932_v30, %v2349_v38 }
 0x1ed   : > { %v2294_v28 = vadd.f32 %v2814_v58, %v5932_v30  ;;  %v2831_v25 = vpop.f32.mrf.mxu1 }
 0x1ee   : > { %v2285_v47 = vpop.f32.mrf.mxu0  ;;  %2428 = vst [vmem:[%s5937_s16 + $0x80] sm:$0xff] %v2350_v11  ;;  %v2361_v36 = vadd.f32 %v2831_v25, %v5932_v30 }
 0x1ef   : > { %2414 = vst [vmem:[%s5937_s16 + $0x10] sm:$0xff] %v2294_v28  ;;  %v2286_v23 = vadd.f32 %v5932_v30, %v2285_v47  ;;  %v2352_v14 = vpop.f32.mrf.mxu1 }
 0x1f0   : > { %v2815_v51 = vpop.f32.mrf.mxu0  ;;  %2431 = vst [vmem:[%s5937_s16 + $0x98] sm:$0xff] %v2361_v36  ;;  %v2353_v55 = vadd.f32 %v5932_v30, %v2352_v14 }
 0x1f1   : > { %2412 = vst [vmem:[%s5937_s16] sm:$0xff] %v2286_v23  ;;  %v2297_v41 = vadd.f32 %v2815_v51, %v5932_v30 }
 0x1f2   : > { %v2288_v1 = vpop.f32.mrf.mxu0  ;;  %2429 = vst [vmem:[%s5937_s16 + $0x88] sm:$0xff] %v2353_v55 }
 0x1f3   : > { %2415 = vst [vmem:[%s5937_s16 + $0x18] sm:$0xff] %v2297_v41  ;;  %v2289_v46 = vadd.f32 %v5932_v30, %v2288_v1 }
 0x1f5   : > { %2413 = vst [vmem:[%s5937_s16 + $0x8] sm:$0xff] %v2289_v46 }
 0x20d   : > { %v2834_v59 = vpop.f32.mrf.mxu1 }
 0x20e   : > { %v2374_v26 = vadd.f32 %v2834_v59, %v5932_v30 }
 0x20f   : > { %v2818_v34 = vpop.f32.mrf.mxu0  ;;  %v2365_v61 = vpop.f32.mrf.mxu1 }
 0x210   : > { %v2310_v52 = vadd.f32 %v2818_v34, %v5932_v30  ;;  %2434 = vst [vmem:[%s5937_s16 + $0xb0] sm:$0xff] %v2374_v26  ;;  %v2366_v20 = vadd.f32 %v5932_v30, %v2365_v61 }
 0x211   : > { %v2301_v6 = vpop.f32.mrf.mxu0  ;;  %v2835_v35 = vpop.f32.mrf.mxu1 }
 0x212   : > { %2418 = vst [vmem:[%s5937_s16 + $0x30] sm:$0xff] %v2310_v52  ;;  %v2302_v3 = vadd.f32 %v5932_v30, %v2301_v6  ;;  %2432 = vst [vmem:[%s5937_s16 + $0xa0] sm:$0xff] %v2366_v20  ;;  %v2377_v10 = vadd.f32 %v2835_v35, %v5932_v30 }
 0x213   : > { %v2819_v53 = vpop.f32.mrf.mxu0  ;;  %v2368_v31 = vpop.f32.mrf.mxu1 }
 0x214   : > { %2416 = vst [vmem:[%s5937_s16 + $0x20] sm:$0xff] %v2302_v3  ;;  %v2313_v8 = vadd.f32 %v2819_v53, %v5932_v30  ;;  %2435 = vst [vmem:[%s5937_s16 + $0xb8] sm:$0xff] %v2377_v10  ;;  %v2369_v40 = vadd.f32 %v5932_v30, %v2368_v31 }
 0x215   : > { %v2304_v29 = vpop.f32.mrf.mxu0 }
 0x216   : > { %2419 = vst [vmem:[%s5937_s16 + $0x38] sm:$0xff] %v2313_v8  ;;  %v2305_v63 = vadd.f32 %v5932_v30, %v2304_v29  ;;  %2433 = vst [vmem:[%s5937_s16 + $0xa8] sm:$0xff] %v2369_v40 }
 0x218   : > { %2417 = vst [vmem:[%s5937_s16 + $0x28] sm:$0xff] %v2305_v63 }
 0x233   : > { %v2838_v49 = vpop.f32.mrf.mxu1 }
 0x234   : > { %v2390_v21 = vadd.f32 %v2838_v49, %v5932_v30 }
 0x235   : > { %v2822_v54 = vpop.f32.mrf.mxu0  ;;  %v2381_v5 = vpop.f32.mrf.mxu1 }
 0x236   : > { %v2326_v18 = vadd.f32 %v2822_v54, %v5932_v30  ;;  %2438 = vst [vmem:[%s5937_s16 + $0xd0] sm:$0xff] %v2390_v21  ;;  %v2382_v0 = vadd.f32 %v5932_v30, %v2381_v5 }
 0x237   : > { %v2317_v12 = vpop.f32.mrf.mxu0  ;;  %v2839_v15 = vpop.f32.mrf.mxu1 }
 0x238   : > { %2422 = vst [vmem:[%s5937_s16 + $0x50] sm:$0xff] %v2326_v18  ;;  %v2318_v39 = vadd.f32 %v5932_v30, %v2317_v12  ;;  %2436 = vst [vmem:[%s5937_s16 + $0xc0] sm:$0xff] %v2382_v0  ;;  %v2393_v19 = vadd.f32 %v2839_v15, %v5932_v30 }
 0x239   : > { %v2823_v17 = vpop.f32.mrf.mxu0  ;;  %v2384_v22 = vpop.f32.mrf.mxu1 }
 0x23a   : > { %2420 = vst [vmem:[%s5937_s16 + $0x40] sm:$0xff] %v2318_v39  ;;  %v2329_v4 = vadd.f32 %v2823_v17, %v5932_v30  ;;  %2439 = vst [vmem:[%s5937_s16 + $0xd8] sm:$0xff] %v2393_v19  ;;  %v2385_v45 = vadd.f32 %v5932_v30, %v2384_v22 }
 0x23b   : > { %v2320_v24 = vpop.f32.mrf.mxu0 }
 0x23c   : > { %2423 = vst [vmem:[%s5937_s16 + $0x58] sm:$0xff] %v2329_v4  ;;  %v2321_v57 = vadd.f32 %v5932_v30, %v2320_v24  ;;  %2437 = vst [vmem:[%s5937_s16 + $0xc8] sm:$0xff] %v2385_v45 }
 0x23e   : > { %2421 = vst [vmem:[%s5937_s16 + $0x48] sm:$0xff] %v2321_v57 }
 0x257   : > { %v2842_v9 = vpop.f32.mrf.mxu1 }
 0x258   : > { %v2406_v13 = vadd.f32 %v2842_v9, %v5932_v30 }
 0x259   : > { %v2826_v27 = vpop.f32.mrf.mxu0  ;;  %v2397_v48 = vpop.f32.mrf.mxu1 }
 0x25a   : > { %v2342_v32 = vadd.f32 %v2826_v27, %v5932_v30  ;;  %2442 = vst [vmem:[%s5937_s16 + $0xf0] sm:$0xff] %v2406_v13  ;;  %v2398_v37 = vadd.f32 %v5932_v30, %v2397_v48 }
 0x25b   : > { %v2333_v43 = vpop.f32.mrf.mxu0  ;;  %v2843_v16 = vpop.f32.mrf.mxu1 }
 0x25c   : > { %2426 = vst [vmem:[%s5937_s16 + $0x70] sm:$0xff] %v2342_v32  ;;  %v2334_v44 = vadd.f32 %v5932_v30, %v2333_v43  ;;  %2440 = vst [vmem:[%s5937_s16 + $0xe0] sm:$0xff] %v2398_v37  ;;  %v2409_v50 = vadd.f32 %v2843_v16, %v5932_v30 }
 0x25d   : > { %v2827_v62 = vpop.f32.mrf.mxu0  ;;  %v2400_v56 = vpop.f32.mrf.mxu1 }
 0x25e   : > { %2424 = vst [vmem:[%s5937_s16 + $0x60] sm:$0xff] %v2334_v44  ;;  %v2345_v7 = vadd.f32 %v2827_v62, %v5932_v30  ;;  %2443 = vst [vmem:[%s5937_s16 + $0xf8] sm:$0xff] %v2409_v50  ;;  %v2401_v2 = vadd.f32 %v5932_v30, %v2400_v56 }
 0x25f   : > { %v2336_v33 = vpop.f32.mrf.mxu0 }
 0x260   : > { %2427 = vst [vmem:[%s5937_s16 + $0x78] sm:$0xff] %v2345_v7  ;;  %v2337_v60 = vadd.f32 %v5932_v30, %v2336_v33  ;;  %2441 = vst [vmem:[%s5937_s16 + $0xe8] sm:$0xff] %v2401_v2 }
 0x262   : > { %2425 = vst [vmem:[%s5937_s16 + $0x68] sm:$0xff] %v2337_v60 }
 0x263 PF: > { %s13_s14 = sadd.s32 1, %s3550_s14   ;;  %s6457_s12 = smov %s3546_s13 }
 0x264   : > { %p10_p5 = scmp.ge.s32.totalorder %s13_s14, 4   ;;  %s6458_s13 = smov %s6460_s15 }
 0x266   :  { %12 = sbr.rel (!%p10_p5) target bundleno = 2 (0x2), region = 65 }

</bundles_post_ra>
